<compile_context>
chip_gen: v6e
topology: v6e:2x2x1
jax: 0.10.0
libtpu: 0.0.40
codegen_flags: <defaults>
</compile_context>

<pallas_src>
import math

import jax
import jax.numpy as jnp
from jax import lax
from jax.experimental import pallas as pl
from jax.experimental.pallas import tpu as pltpu


def _round_up(x: int, m: int) -> int:
    return (x + m - 1) // m * m


def _cdiv(a: int, b: int) -> int:
    return -(-a // b)


# ---------------------------------------------------------------------------
# 1. Fused TokenEmbedding * sqrt(E) + PositionalEncoding
# ---------------------------------------------------------------------------
def embed_posenc(tokens: jax.Array, emb_table: jax.Array,
                 pos_table: jax.Array, *, tokens_per_block: int = 32
                 ) -> jax.Array:
    """out[s, b, :] = emb_table[tokens[s, b]] * sqrt(E) + pos_table[s, :]

    tokens:    (S, B) integer token ids (seq-first, like PyTorch nn.Transformer).
    emb_table: (V, E) embedding weight (nn.Embedding.weight).
    pos_table: (maxlen, E) positional-encoding buffer, maxlen >= S.
    returns    (S, B, E).
    """
    S, B = tokens.shape
    V, E = emb_table.shape
    assert pos_table.shape[0] >= S and pos_table.shape[1] == E
    scale = float(math.sqrt(E))

    # Positions handled per grid step.  Ts*B output rows per block; keep the
    # row count a multiple of 8 (sublane-dense stores / dense HBM writeback)
    # and roughly `tokens_per_block` gather DMAs in flight per step.
    step = 8 // math.gcd(B, 8)
    Ts = max(1, tokens_per_block // B, _cdiv(8, B))
    Ts = min(Ts, S)
    Ts = _round_up(Ts, step)
    Sp = _round_up(S, Ts)
    T = Ts * B                          # rows (tokens) per grid step
    Np = Sp * B

    # Token ids -> SMEM scalar prefetch.  Pad along S and clamp so every
    # gather DMA stays in-bounds even for bad / padding ids.
    tok = tokens.astype(jnp.int32)
    if Sp != S:
        tok = jnp.pad(tok, ((0, Sp - S), (0, 0)))
    tok_flat = jnp.clip(tok, 0, V - 1).reshape(Np)

    # Positional rows actually needed, padded along S.
    pos_slab = pos_table[:S]
    if Sp != S:
        pos_slab = jnp.pad(pos_slab, ((0, Sp - S), (0, 0)))

    out_dtype = emb_table.dtype

    def kernel(tok_ref, emb_hbm, pos_ref, o_ref, gbuf, sems):
        base = pl.program_id(0) * T
        # Issue all T embedding-row gathers for this block (kept in flight
        # together so the random-row HBM latency overlaps).
        for t in range(T):
            tid = tok_ref[base + t]
            pltpu.make_async_copy(emb_hbm.at[pl.ds(tid, 1), :],
                                  gbuf.at[pl.ds(t, 1), :],
                                  sems.at[t]).start()
        for t in range(T):
            pltpu.make_async_copy(emb_hbm.at[pl.ds(0, 1), :],
                                  gbuf.at[pl.ds(t, 1), :],
                                  sems.at[t]).wait()
        if B == 1:
            o_ref[...] = (gbuf[...] * scale + pos_ref[...]).astype(o_ref.dtype)
        else:
            # The same (Ts, E) pos tile serves all B batch rows of each
            # position -> each pos row is DMA'd once per block, not per token.
            for s in range(Ts):
                rows = (gbuf[pl.ds(s * B, B), :] * scale
                        + pos_ref[pl.ds(s, 1), :])
                o_ref[pl.ds(s * B, B), :] = rows.astype(o_ref.dtype)

    itemsize = jnp.dtype(emb_table.dtype).itemsize
    cost = pl.CostEstimate(
        flops=2 * S * B * E,
        transcendentals=0,
        bytes_accessed=(2 * S * B * E + S * E) * itemsize,
    )

    out = pl.pallas_call(
        kernel,
        out_shape=jax.ShapeDtypeStruct((Np, E), out_dtype),
        grid_spec=pltpu.PrefetchScalarGridSpec(
            num_scalar_prefetch=1,
            grid=(Sp // Ts,),
            in_specs=[
                pl.BlockSpec(memory_space=pl.ANY),              # emb table (HBM)
                pl.BlockSpec((Ts, E), lambda i, tok: (i, 0)),   # pos rows
            ],
            out_specs=pl.BlockSpec((T, E), lambda i, tok: (i, 0)),
            scratch_shapes=[
                pltpu.VMEM((T, E), emb_table.dtype),            # gather buffer
                pltpu.SemaphoreType.DMA((T,)),
            ],
        ),
        compiler_params=pltpu.CompilerParams(
            dimension_semantics=("parallel",)),
        cost_estimate=cost,
    )(tok_flat, emb_table, pos_slab)

    return out.reshape(Sp, B, E)[:S]


# ---------------------------------------------------------------------------
# 2. generator = nn.Linear(emb_size, tgt_vocab) as a tiled MXU matmul
# ---------------------------------------------------------------------------
def prepare_generator_params(weight: jax.Array, bias: jax.Array, *,
                             tn: int = 256):
    """One-time prep of the nn.Linear parameters for generator_linear.

    Casts the weight to bf16 (native MXU input dtype), zero-pads Vt to a
    multiple of the output tile and E to a multiple of 128, and keeps the
    native (Vt, E) layout (no transpose).  Call once at parameter-load time,
    NOT per forward call.
    """
    Vt, E = weight.shape
    Ep = _round_up(E, 128)
    tn_eff = min(tn, _round_up(Vt, 128))
    Vtp = _round_up(Vt, tn_eff)
    w = weight.astype(jnp.bfloat16)
    if Vtp != Vt or Ep != E:
        w = jnp.pad(w, ((0, Vtp - Vt), (0, Ep - E)))
    b = bias.astype(jnp.float32).reshape(1, Vt)
    if Vtp != Vt:
        b = jnp.pad(b, ((0, 0), (0, Vtp - Vt)))
    return w, b, Vt, tn_eff


def generator_linear(x: jax.Array, gen_params, *, tm: int = 256,
                     out_dtype=jnp.float32) -> jax.Array:
    """PyTorch nn.Linear: y = x @ weight.T + bias, as a tiled MXU matmul.

    x: (..., E).  gen_params: output of prepare_generator_params.
    bf16 MXU operands with f32 accumulation; returns (..., Vt) in out_dtype
    (pass out_dtype=jnp.bfloat16 to halve the logits write-back traffic).
    """
    w_p, b_p, Vt, tn_eff = gen_params
    Vtp, Ep = w_p.shape
    lead = x.shape[:-1]
    E = x.shape[-1]
    assert E <= Ep

    M = 1
    for d in lead:
        M *= d

    x2 = x.reshape(M, E).astype(jnp.bfloat16)
    tm_eff = min(tm, _round_up(M, 16))
    Mp = _round_up(M, tm_eff)
    if Mp != M or Ep != E:
        x2 = jnp.pad(x2, ((0, Mp - M), (0, Ep - E)))

    gm, gn = Mp // tm_eff, Vtp // tn_eff

    def kernel(x_ref, w_ref, b_ref, o_ref):
        acc = lax.dot_general(
            x_ref[...], w_ref[...],
            dimension_numbers=(((1,), (1,)), ((), ())),   # x @ w.T on the MXU
            preferred_element_type=jnp.float32)
        o_ref[...] = (acc + b_ref[...]).astype(o_ref.dtype)

    # Pick the grid order that minimizes HBM traffic: the operand whose
    # re-streaming costs more is held stationary across the inner loop.
    bytes_x, bytes_w = Mp * Ep * 2, Vtp * Ep * 2
    n_outer = (bytes_w + gn * bytes_x) < (bytes_x + gm * bytes_w)
    if n_outer:   # big-vocab regime: weight is streamed exactly once
        grid = (gn, gm)
        x_spec = pl.BlockSpec((tm_eff, Ep), lambda j, i: (i, 0))
        w_spec = pl.BlockSpec((tn_eff, Ep), lambda j, i: (j, 0))
        b_spec = pl.BlockSpec((1, tn_eff), lambda j, i: (0, j))
        o_spec = pl.BlockSpec((tm_eff, tn_eff), lambda j, i: (i, j))
    else:
        grid = (gm, gn)
        x_spec = pl.BlockSpec((tm_eff, Ep), lambda i, j: (i, 0))
        w_spec = pl.BlockSpec((tn_eff, Ep), lambda i, j: (j, 0))
        b_spec = pl.BlockSpec((1, tn_eff), lambda i, j: (0, j))
        o_spec = pl.BlockSpec((tm_eff, tn_eff), lambda i, j: (i, j))

    cost = pl.CostEstimate(
        flops=2 * M * Vt * E,
        transcendentals=0,
        bytes_accessed=bytes_x + bytes_w
        + Mp * Vtp * jnp.dtype(out_dtype).itemsize,
    )

    out = pl.pallas_call(
        kernel,
        out_shape=jax.ShapeDtypeStruct((Mp, Vtp), out_dtype),
        grid_spec=pltpu.PrefetchScalarGridSpec(
            num_scalar_prefetch=0,
            grid=grid,
            in_specs=[x_spec, w_spec, b_spec],
            out_specs=o_spec,
        ),
        compiler_params=pltpu.CompilerParams(
            dimension_semantics=("parallel", "parallel")),
        cost_estimate=cost,
    )(x2, w_p, b_p)

    return out[:M, :Vt].reshape(*lead, Vt)


if __name__ == "__main__":
    # Small shapes consistent with Seq2SeqTransformer.
    emb_size = 128
    src_vocab = 256
    tgt_vocab = 256
    seq_len = 8
    batch = 2
    maxlen = 1000   # PositionalEncoding default

    key = jax.random.PRNGKey(0)
    k_src, k_tgt, k_se, k_te, k_gw, k_gb = jax.random.split(key, 6)

    # Stand-ins for the nn.Module parameters.
    src_emb_w = jax.random.normal(k_se, (src_vocab, emb_size), jnp.float32)
    tgt_emb_w = jax.random.normal(k_te, (tgt_vocab, emb_size), jnp.float32)
    gen_w = jax.random.normal(k_gw, (tgt_vocab, emb_size), jnp.float32) * 0.02
    gen_b = jax.random.normal(k_gb, (tgt_vocab,), jnp.float32)

    # PositionalEncoding buffer, built exactly like the PyTorch module.
    den = jnp.exp(-jnp.arange(0, emb_size, 2, dtype=jnp.float32)
                  * (math.log(10000.0) / emb_size))
    pos = jnp.arange(maxlen, dtype=jnp.float32)[:, None]
    pos_table = jnp.zeros((maxlen, emb_size), jnp.float32)
    pos_table = pos_table.at[:, 0::2].set(jnp.sin(pos * den))
    pos_table = pos_table.at[:, 1::2].set(jnp.cos(pos * den))

    # Token ids, seq-first (S, B) like PyTorch nn.Transformer.
    src = jax.random.randint(k_src, (seq_len, batch), 0, src_vocab,
                             dtype=jnp.int32)
    trg = jax.random.randint(k_tgt, (seq_len, batch), 0, tgt_vocab,
                             dtype=jnp.int32)

    # --- Pallas: embedding front-end (dropout is identity at inference) -----
    src_emb = embed_posenc(src, src_emb_w, pos_table)
    tgt_emb = embed_posenc(trg, tgt_emb_w, pos_table)

    # TODO(synk): nn.Transformer encoder/decoder stack not implemented in
    # Pallas; use the tgt embedding as a stand-in input to exercise the
    # generator projection kernel below.
    outs = tgt_emb

    # --- Pallas: generator projection (params prepared once) ----------------
    gen_params = prepare_generator_params(gen_w, gen_b)
    logits = generator_linear(outs, gen_params)

    src_emb = jax.block_until_ready(src_emb)
    tgt_emb = jax.block_until_ready(tgt_emb)
    logits = jax.block_until_ready(logits)

    # --- Pure-JAX references (same math as the PyTorch eval forward stages) -
    scale = math.sqrt(emb_size)
    ref_src = jnp.take(src_emb_w, src, axis=0) * scale \
        + pos_table[:seq_len, None, :]
    ref_tgt = jnp.take(tgt_emb_w, trg, axis=0) * scale \
        + pos_table[:seq_len, None, :]
    # The Pallas generator feeds the MXU bf16 operands (f32 accumulation);
    # the reference mirrors that rounding so the comparison is precision-fair.
    x_bf = ref_tgt.astype(jnp.bfloat16).astype(jnp.float32)
    w_bf = gen_w.astype(jnp.bfloat16).astype(jnp.float32)
    ref_logits = jnp.einsum('sbe,ve->sbv', x_bf, w_bf) + gen_b

    assert src_emb.shape == (seq_len, batch, emb_size)
    assert tgt_emb.shape == (seq_len, batch, emb_size)
    assert logits.shape == (seq_len, batch, tgt_vocab)
    assert jnp.allclose(src_emb, ref_src, atol=1e-5, rtol=1e-5)
    assert jnp.allclose(tgt_emb, ref_tgt, atol=1e-5, rtol=1e-5)
    assert jnp.allclose(logits, ref_logits, atol=1e-3, rtol=1e-3)

    print("KERNEL_OK")
</pallas_src>

<mosaic_0001>
module attributes {stable_mosaic.version = 11 : i64} {
  func.func @kernel(%arg0: i32, %arg1: memref<16xi32, #tpu.memory_space<smem>>, %arg2: memref<256x128xf32, #tpu.memory_space<any>>, %arg3: memref<8x128xf32, #tpu.memory_space<vmem>>, %arg4: memref<16x128xf32, #tpu.memory_space<vmem>>, %arg5: memref<16x128xf32, #tpu.memory_space<vmem>>, %arg6: memref<16x!tpu.dma_semaphore, #tpu.memory_space<semaphore_mem>>) attributes {dimension_semantics = [#tpu.dimension_semantics<parallel>], iteration_bounds = array<i64: 1>, scalar_prefetch = 1 : i64, scratch_operands = 2 : i64, tpu.core_type = #tpu.core_type<tc>, window_params = [{}, {transform_indices = @transform_1, window_bounds = array<i64: 8, 128>}, {transform_indices = @transform_2, window_bounds = array<i64: 16, 128>}]} {
    %c16_i32 = arith.constant 16 : i32
    %0 = arith.muli %arg0, %c16_i32 : i32
    %c0_i32 = arith.constant 0 : i32
    %1 = arith.addi %0, %c0_i32 : i32
    %2 = arith.index_cast %1 : i32 to index
    %3 = memref.load %arg1[%2] : memref<16xi32, #tpu.memory_space<smem>>
    %c0_i32_0 = arith.constant 0 : i32
    %c0_i32_1 = arith.constant 0 : i32
    %4 = tpu.memref_slice %arg2[%3, %c0_i32_1] : memref<256x128xf32, #tpu.memory_space<any>> -> memref<1x128xf32, #tpu.memory_space<any>>
    %c0_i32_2 = arith.constant 0 : i32
    %c0_i32_3 = arith.constant 0 : i32
    %5 = tpu.memref_slice %arg5[%c0_i32_2, %c0_i32_3] : memref<16x128xf32, #tpu.memory_space<vmem>> -> memref<1x128xf32, #tpu.memory_space<vmem>>
    %6 = tpu.memref_slice %arg6[%c0_i32_0] : memref<16x!tpu.dma_semaphore, #tpu.memory_space<semaphore_mem>> -> memref<1x!tpu.dma_semaphore, #tpu.memory_space<semaphore_mem>>
    %7 = tpu.memref_squeeze %6 : memref<1x!tpu.dma_semaphore, #tpu.memory_space<semaphore_mem>> -> memref<!tpu.dma_semaphore, #tpu.memory_space<semaphore_mem>>
    tpu.enqueue_dma source(%4 : memref<1x128xf32, #tpu.memory_space<any>>) target(%5 : memref<1x128xf32, #tpu.memory_space<vmem>>) target_semaphore(%7 : memref<!tpu.dma_semaphore, #tpu.memory_space<semaphore_mem>>)
    %c1_i32 = arith.constant 1 : i32
    %8 = arith.addi %0, %c1_i32 : i32
    %9 = arith.index_cast %8 : i32 to index
    %10 = memref.load %arg1[%9] : memref<16xi32, #tpu.memory_space<smem>>
    %c1_i32_4 = arith.constant 1 : i32
    %c0_i32_5 = arith.constant 0 : i32
    %11 = tpu.memref_slice %arg2[%10, %c0_i32_5] : memref<256x128xf32, #tpu.memory_space<any>> -> memref<1x128xf32, #tpu.memory_space<any>>
    %c1_i32_6 = arith.constant 1 : i32
    %c0_i32_7 = arith.constant 0 : i32
    %12 = tpu.memref_slice %arg5[%c1_i32_6, %c0_i32_7] : memref<16x128xf32, #tpu.memory_space<vmem>> -> memref<1x128xf32, #tpu.memory_space<vmem>>
    %13 = tpu.memref_slice %arg6[%c1_i32_4] : memref<16x!tpu.dma_semaphore, #tpu.memory_space<semaphore_mem>> -> memref<1x!tpu.dma_semaphore, #tpu.memory_space<semaphore_mem>>
    %14 = tpu.memref_squeeze %13 : memref<1x!tpu.dma_semaphore, #tpu.memory_space<semaphore_mem>> -> memref<!tpu.dma_semaphore, #tpu.memory_space<semaphore_mem>>
    tpu.enqueue_dma source(%11 : memref<1x128xf32, #tpu.memory_space<any>>) target(%12 : memref<1x128xf32, #tpu.memory_space<vmem>>) target_semaphore(%14 : memref<!tpu.dma_semaphore, #tpu.memory_space<semaphore_mem>>)
    %c2_i32 = arith.constant 2 : i32
    %15 = arith.addi %0, %c2_i32 : i32
    %16 = arith.index_cast %15 : i32 to index
    %17 = memref.load %arg1[%16] : memref<16xi32, #tpu.memory_space<smem>>
    %c2_i32_8 = arith.constant 2 : i32
    %c0_i32_9 = arith.constant 0 : i32
    %18 = tpu.memref_slice %arg2[%17, %c0_i32_9] : memref<256x128xf32, #tpu.memory_space<any>> -> memref<1x128xf32, #tpu.memory_space<any>>
    %c2_i32_10 = arith.constant 2 : i32
    %c0_i32_11 = arith.constant 0 : i32
    %19 = tpu.memref_slice %arg5[%c2_i32_10, %c0_i32_11] : memref<16x128xf32, #tpu.memory_space<vmem>> -> memref<1x128xf32, #tpu.memory_space<vmem>>
    %20 = tpu.memref_slice %arg6[%c2_i32_8] : memref<16x!tpu.dma_semaphore, #tpu.memory_space<semaphore_mem>> -> memref<1x!tpu.dma_semaphore, #tpu.memory_space<semaphore_mem>>
    %21 = tpu.memref_squeeze %20 : memref<1x!tpu.dma_semaphore, #tpu.memory_space<semaphore_mem>> -> memref<!tpu.dma_semaphore, #tpu.memory_space<semaphore_mem>>
    tpu.enqueue_dma source(%18 : memref<1x128xf32, #tpu.memory_space<any>>) target(%19 : memref<1x128xf32, #tpu.memory_space<vmem>>) target_semaphore(%21 : memref<!tpu.dma_semaphore, #tpu.memory_space<semaphore_mem>>)
    %c3_i32 = arith.constant 3 : i32
    %22 = arith.addi %0, %c3_i32 : i32
    %23 = arith.index_cast %22 : i32 to index
    %24 = memref.load %arg1[%23] : memref<16xi32, #tpu.memory_space<smem>>
    %c3_i32_12 = arith.constant 3 : i32
    %c0_i32_13 = arith.constant 0 : i32
    %25 = tpu.memref_slice %arg2[%24, %c0_i32_13] : memref<256x128xf32, #tpu.memory_space<any>> -> memref<1x128xf32, #tpu.memory_space<any>>
    %c3_i32_14 = arith.constant 3 : i32
    %c0_i32_15 = arith.constant 0 : i32
    %26 = tpu.memref_slice %arg5[%c3_i32_14, %c0_i32_15] : memref<16x128xf32, #tpu.memory_space<vmem>> -> memref<1x128xf32, #tpu.memory_space<vmem>>
    %27 = tpu.memref_slice %arg6[%c3_i32_12] : memref<16x!tpu.dma_semaphore, #tpu.memory_space<semaphore_mem>> -> memref<1x!tpu.dma_semaphore, #tpu.memory_space<semaphore_mem>>
    %28 = tpu.memref_squeeze %27 : memref<1x!tpu.dma_semaphore, #tpu.memory_space<semaphore_mem>> -> memref<!tpu.dma_semaphore, #tpu.memory_space<semaphore_mem>>
    tpu.enqueue_dma source(%25 : memref<1x128xf32, #tpu.memory_space<any>>) target(%26 : memref<1x128xf32, #tpu.memory_space<vmem>>) target_semaphore(%28 : memref<!tpu.dma_semaphore, #tpu.memory_space<semaphore_mem>>)
    %c4_i32 = arith.constant 4 : i32
    %29 = arith.addi %0, %c4_i32 : i32
    %30 = arith.index_cast %29 : i32 to index
    %31 = memref.load %arg1[%30] : memref<16xi32, #tpu.memory_space<smem>>
    %c4_i32_16 = arith.constant 4 : i32
    %c0_i32_17 = arith.constant 0 : i32
    %32 = tpu.memref_slice %arg2[%31, %c0_i32_17] : memref<256x128xf32, #tpu.memory_space<any>> -> memref<1x128xf32, #tpu.memory_space<any>>
    %c4_i32_18 = arith.constant 4 : i32
    %c0_i32_19 = arith.constant 0 : i32
    %33 = tpu.memref_slice %arg5[%c4_i32_18, %c0_i32_19] : memref<16x128xf32, #tpu.memory_space<vmem>> -> memref<1x128xf32, #tpu.memory_space<vmem>>
    %34 = tpu.memref_slice %arg6[%c4_i32_16] : memref<16x!tpu.dma_semaphore, #tpu.memory_space<semaphore_mem>> -> memref<1x!tpu.dma_semaphore, #tpu.memory_space<semaphore_mem>>
    %35 = tpu.memref_squeeze %34 : memref<1x!tpu.dma_semaphore, #tpu.memory_space<semaphore_mem>> -> memref<!tpu.dma_semaphore, #tpu.memory_space<semaphore_mem>>
    tpu.enqueue_dma source(%32 : memref<1x128xf32, #tpu.memory_space<any>>) target(%33 : memref<1x128xf32, #tpu.memory_space<vmem>>) target_semaphore(%35 : memref<!tpu.dma_semaphore, #tpu.memory_space<semaphore_mem>>)
    %c5_i32 = arith.constant 5 : i32
    %36 = arith.addi %0, %c5_i32 : i32
    %37 = arith.index_cast %36 : i32 to index
    %38 = memref.load %arg1[%37] : memref<16xi32, #tpu.memory_space<smem>>
    %c5_i32_20 = arith.constant 5 : i32
    %c0_i32_21 = arith.constant 0 : i32
    %39 = tpu.memref_slice %arg2[%38, %c0_i32_21] : memref<256x128xf32, #tpu.memory_space<any>> -> memref<1x128xf32, #tpu.memory_space<any>>
    %c5_i32_22 = arith.constant 5 : i32
    %c0_i32_23 = arith.constant 0 : i32
    %40 = tpu.memref_slice %arg5[%c5_i32_22, %c0_i32_23] : memref<16x128xf32, #tpu.memory_space<vmem>> -> memref<1x128xf32, #tpu.memory_space<vmem>>
    %41 = tpu.memref_slice %arg6[%c5_i32_20] : memref<16x!tpu.dma_semaphore, #tpu.memory_space<semaphore_mem>> -> memref<1x!tpu.dma_semaphore, #tpu.memory_space<semaphore_mem>>
    %42 = tpu.memref_squeeze %41 : memref<1x!tpu.dma_semaphore, #tpu.memory_space<semaphore_mem>> -> memref<!tpu.dma_semaphore, #tpu.memory_space<semaphore_mem>>
    tpu.enqueue_dma source(%39 : memref<1x128xf32, #tpu.memory_space<any>>) target(%40 : memref<1x128xf32, #tpu.memory_space<vmem>>) target_semaphore(%42 : memref<!tpu.dma_semaphore, #tpu.memory_space<semaphore_mem>>)
    %c6_i32 = arith.constant 6 : i32
    %43 = arith.addi %0, %c6_i32 : i32
    %44 = arith.index_cast %43 : i32 to index
    %45 = memref.load %arg1[%44] : memref<16xi32, #tpu.memory_space<smem>>
    %c6_i32_24 = arith.constant 6 : i32
    %c0_i32_25 = arith.constant 0 : i32
    %46 = tpu.memref_slice %arg2[%45, %c0_i32_25] : memref<256x128xf32, #tpu.memory_space<any>> -> memref<1x128xf32, #tpu.memory_space<any>>
    %c6_i32_26 = arith.constant 6 : i32
    %c0_i32_27 = arith.constant 0 : i32
    %47 = tpu.memref_slice %arg5[%c6_i32_26, %c0_i32_27] : memref<16x128xf32, #tpu.memory_space<vmem>> -> memref<1x128xf32, #tpu.memory_space<vmem>>
    %48 = tpu.memref_slice %arg6[%c6_i32_24] : memref<16x!tpu.dma_semaphore, #tpu.memory_space<semaphore_mem>> -> memref<1x!tpu.dma_semaphore, #tpu.memory_space<semaphore_mem>>
    %49 = tpu.memref_squeeze %48 : memref<1x!tpu.dma_semaphore, #tpu.memory_space<semaphore_mem>> -> memref<!tpu.dma_semaphore, #tpu.memory_space<semaphore_mem>>
    tpu.enqueue_dma source(%46 : memref<1x128xf32, #tpu.memory_space<any>>) target(%47 : memref<1x128xf32, #tpu.memory_space<vmem>>) target_semaphore(%49 : memref<!tpu.dma_semaphore, #tpu.memory_space<semaphore_mem>>)
    %c7_i32 = arith.constant 7 : i32
    %50 = arith.addi %0, %c7_i32 : i32
    %51 = arith.index_cast %50 : i32 to index
    %52 = memref.load %arg1[%51] : memref<16xi32, #tpu.memory_space<smem>>
    %c7_i32_28 = arith.constant 7 : i32
    %c0_i32_29 = arith.constant 0 : i32
    %53 = tpu.memref_slice %arg2[%52, %c0_i32_29] : memref<256x128xf32, #tpu.memory_space<any>> -> memref<1x128xf32, #tpu.memory_space<any>>
    %c7_i32_30 = arith.constant 7 : i32
    %c0_i32_31 = arith.constant 0 : i32
    %54 = tpu.memref_slice %arg5[%c7_i32_30, %c0_i32_31] : memref<16x128xf32, #tpu.memory_space<vmem>> -> memref<1x128xf32, #tpu.memory_space<vmem>>
    %55 = tpu.memref_slice %arg6[%c7_i32_28] : memref<16x!tpu.dma_semaphore, #tpu.memory_space<semaphore_mem>> -> memref<1x!tpu.dma_semaphore, #tpu.memory_space<semaphore_mem>>
    %56 = tpu.memref_squeeze %55 : memref<1x!tpu.dma_semaphore, #tpu.memory_space<semaphore_mem>> -> memref<!tpu.dma_semaphore, #tpu.memory_space<semaphore_mem>>
    tpu.enqueue_dma source(%53 : memref<1x128xf32, #tpu.memory_space<any>>) target(%54 : memref<1x128xf32, #tpu.memory_space<vmem>>) target_semaphore(%56 : memref<!tpu.dma_semaphore, #tpu.memory_space<semaphore_mem>>)
    %c8_i32 = arith.constant 8 : i32
    %57 = arith.addi %0, %c8_i32 : i32
    %58 = arith.index_cast %57 : i32 to index
    %59 = memref.load %arg1[%58] : memref<16xi32, #tpu.memory_space<smem>>
    %c8_i32_32 = arith.constant 8 : i32
    %c0_i32_33 = arith.constant 0 : i32
    %60 = tpu.memref_slice %arg2[%59, %c0_i32_33] : memref<256x128xf32, #tpu.memory_space<any>> -> memref<1x128xf32, #tpu.memory_space<any>>
    %c8_i32_34 = arith.constant 8 : i32
    %c0_i32_35 = arith.constant 0 : i32
    %61 = tpu.memref_slice %arg5[%c8_i32_34, %c0_i32_35] : memref<16x128xf32, #tpu.memory_space<vmem>> -> memref<1x128xf32, #tpu.memory_space<vmem>>
    %62 = tpu.memref_slice %arg6[%c8_i32_32] : memref<16x!tpu.dma_semaphore, #tpu.memory_space<semaphore_mem>> -> memref<1x!tpu.dma_semaphore, #tpu.memory_space<semaphore_mem>>
    %63 = tpu.memref_squeeze %62 : memref<1x!tpu.dma_semaphore, #tpu.memory_space<semaphore_mem>> -> memref<!tpu.dma_semaphore, #tpu.memory_space<semaphore_mem>>
    tpu.enqueue_dma source(%60 : memref<1x128xf32, #tpu.memory_space<any>>) target(%61 : memref<1x128xf32, #tpu.memory_space<vmem>>) target_semaphore(%63 : memref<!tpu.dma_semaphore, #tpu.memory_space<semaphore_mem>>)
    %c9_i32 = arith.constant 9 : i32
    %64 = arith.addi %0, %c9_i32 : i32
    %65 = arith.index_cast %64 : i32 to index
    %66 = memref.load %arg1[%65] : memref<16xi32, #tpu.memory_space<smem>>
    %c9_i32_36 = arith.constant 9 : i32
    %c0_i32_37 = arith.constant 0 : i32
    %67 = tpu.memref_slice %arg2[%66, %c0_i32_37] : memref<256x128xf32, #tpu.memory_space<any>> -> memref<1x128xf32, #tpu.memory_space<any>>
    %c9_i32_38 = arith.constant 9 : i32
    %c0_i32_39 = arith.constant 0 : i32
    %68 = tpu.memref_slice %arg5[%c9_i32_38, %c0_i32_39] : memref<16x128xf32, #tpu.memory_space<vmem>> -> memref<1x128xf32, #tpu.memory_space<vmem>>
    %69 = tpu.memref_slice %arg6[%c9_i32_36] : memref<16x!tpu.dma_semaphore, #tpu.memory_space<semaphore_mem>> -> memref<1x!tpu.dma_semaphore, #tpu.memory_space<semaphore_mem>>
    %70 = tpu.memref_squeeze %69 : memref<1x!tpu.dma_semaphore, #tpu.memory_space<semaphore_mem>> -> memref<!tpu.dma_semaphore, #tpu.memory_space<semaphore_mem>>
    tpu.enqueue_dma source(%67 : memref<1x128xf32, #tpu.memory_space<any>>) target(%68 : memref<1x128xf32, #tpu.memory_space<vmem>>) target_semaphore(%70 : memref<!tpu.dma_semaphore, #tpu.memory_space<semaphore_mem>>)
    %c10_i32 = arith.constant 10 : i32
    %71 = arith.addi %0, %c10_i32 : i32
    %72 = arith.index_cast %71 : i32 to index
    %73 = memref.load %arg1[%72] : memref<16xi32, #tpu.memory_space<smem>>
    %c10_i32_40 = arith.constant 10 : i32
    %c0_i32_41 = arith.constant 0 : i32
    %74 = tpu.memref_slice %arg2[%73, %c0_i32_41] : memref<256x128xf32, #tpu.memory_space<any>> -> memref<1x128xf32, #tpu.memory_space<any>>
    %c10_i32_42 = arith.constant 10 : i32
    %c0_i32_43 = arith.constant 0 : i32
    %75 = tpu.memref_slice %arg5[%c10_i32_42, %c0_i32_43] : memref<16x128xf32, #tpu.memory_space<vmem>> -> memref<1x128xf32, #tpu.memory_space<vmem>>
    %76 = tpu.memref_slice %arg6[%c10_i32_40] : memref<16x!tpu.dma_semaphore, #tpu.memory_space<semaphore_mem>> -> memref<1x!tpu.dma_semaphore, #tpu.memory_space<semaphore_mem>>
    %77 = tpu.memref_squeeze %76 : memref<1x!tpu.dma_semaphore, #tpu.memory_space<semaphore_mem>> -> memref<!tpu.dma_semaphore, #tpu.memory_space<semaphore_mem>>
    tpu.enqueue_dma source(%74 : memref<1x128xf32, #tpu.memory_space<any>>) target(%75 : memref<1x128xf32, #tpu.memory_space<vmem>>) target_semaphore(%77 : memref<!tpu.dma_semaphore, #tpu.memory_space<semaphore_mem>>)
    %c11_i32 = arith.constant 11 : i32
    %78 = arith.addi %0, %c11_i32 : i32
    %79 = arith.index_cast %78 : i32 to index
    %80 = memref.load %arg1[%79] : memref<16xi32, #tpu.memory_space<smem>>
    %c11_i32_44 = arith.constant 11 : i32
    %c0_i32_45 = arith.constant 0 : i32
    %81 = tpu.memref_slice %arg2[%80, %c0_i32_45] : memref<256x128xf32, #tpu.memory_space<any>> -> memref<1x128xf32, #tpu.memory_space<any>>
    %c11_i32_46 = arith.constant 11 : i32
    %c0_i32_47 = arith.constant 0 : i32
    %82 = tpu.memref_slice %arg5[%c11_i32_46, %c0_i32_47] : memref<16x128xf32, #tpu.memory_space<vmem>> -> memref<1x128xf32, #tpu.memory_space<vmem>>
    %83 = tpu.memref_slice %arg6[%c11_i32_44] : memref<16x!tpu.dma_semaphore, #tpu.memory_space<semaphore_mem>> -> memref<1x!tpu.dma_semaphore, #tpu.memory_space<semaphore_mem>>
    %84 = tpu.memref_squeeze %83 : memref<1x!tpu.dma_semaphore, #tpu.memory_space<semaphore_mem>> -> memref<!tpu.dma_semaphore, #tpu.memory_space<semaphore_mem>>
    tpu.enqueue_dma source(%81 : memref<1x128xf32, #tpu.memory_space<any>>) target(%82 : memref<1x128xf32, #tpu.memory_space<vmem>>) target_semaphore(%84 : memref<!tpu.dma_semaphore, #tpu.memory_space<semaphore_mem>>)
    %c12_i32 = arith.constant 12 : i32
    %85 = arith.addi %0, %c12_i32 : i32
    %86 = arith.index_cast %85 : i32 to index
    %87 = memref.load %arg1[%86] : memref<16xi32, #tpu.memory_space<smem>>
    %c12_i32_48 = arith.constant 12 : i32
    %c0_i32_49 = arith.constant 0 : i32
    %88 = tpu.memref_slice %arg2[%87, %c0_i32_49] : memref<256x128xf32, #tpu.memory_space<any>> -> memref<1x128xf32, #tpu.memory_space<any>>
    %c12_i32_50 = arith.constant 12 : i32
    %c0_i32_51 = arith.constant 0 : i32
    %89 = tpu.memref_slice %arg5[%c12_i32_50, %c0_i32_51] : memref<16x128xf32, #tpu.memory_space<vmem>> -> memref<1x128xf32, #tpu.memory_space<vmem>>
    %90 = tpu.memref_slice %arg6[%c12_i32_48] : memref<16x!tpu.dma_semaphore, #tpu.memory_space<semaphore_mem>> -> memref<1x!tpu.dma_semaphore, #tpu.memory_space<semaphore_mem>>
    %91 = tpu.memref_squeeze %90 : memref<1x!tpu.dma_semaphore, #tpu.memory_space<semaphore_mem>> -> memref<!tpu.dma_semaphore, #tpu.memory_space<semaphore_mem>>
    tpu.enqueue_dma source(%88 : memref<1x128xf32, #tpu.memory_space<any>>) target(%89 : memref<1x128xf32, #tpu.memory_space<vmem>>) target_semaphore(%91 : memref<!tpu.dma_semaphore, #tpu.memory_space<semaphore_mem>>)
    %c13_i32 = arith.constant 13 : i32
    %92 = arith.addi %0, %c13_i32 : i32
    %93 = arith.index_cast %92 : i32 to index
    %94 = memref.load %arg1[%93] : memref<16xi32, #tpu.memory_space<smem>>
    %c13_i32_52 = arith.constant 13 : i32
    %c0_i32_53 = arith.constant 0 : i32
    %95 = tpu.memref_slice %arg2[%94, %c0_i32_53] : memref<256x128xf32, #tpu.memory_space<any>> -> memref<1x128xf32, #tpu.memory_space<any>>
    %c13_i32_54 = arith.constant 13 : i32
    %c0_i32_55 = arith.constant 0 : i32
    %96 = tpu.memref_slice %arg5[%c13_i32_54, %c0_i32_55] : memref<16x128xf32, #tpu.memory_space<vmem>> -> memref<1x128xf32, #tpu.memory_space<vmem>>
    %97 = tpu.memref_slice %arg6[%c13_i32_52] : memref<16x!tpu.dma_semaphore, #tpu.memory_space<semaphore_mem>> -> memref<1x!tpu.dma_semaphore, #tpu.memory_space<semaphore_mem>>
    %98 = tpu.memref_squeeze %97 : memref<1x!tpu.dma_semaphore, #tpu.memory_space<semaphore_mem>> -> memref<!tpu.dma_semaphore, #tpu.memory_space<semaphore_mem>>
    tpu.enqueue_dma source(%95 : memref<1x128xf32, #tpu.memory_space<any>>) target(%96 : memref<1x128xf32, #tpu.memory_space<vmem>>) target_semaphore(%98 : memref<!tpu.dma_semaphore, #tpu.memory_space<semaphore_mem>>)
    %c14_i32 = arith.constant 14 : i32
    %99 = arith.addi %0, %c14_i32 : i32
    %100 = arith.index_cast %99 : i32 to index
    %101 = memref.load %arg1[%100] : memref<16xi32, #tpu.memory_space<smem>>
    %c14_i32_56 = arith.constant 14 : i32
    %c0_i32_57 = arith.constant 0 : i32
    %102 = tpu.memref_slice %arg2[%101, %c0_i32_57] : memref<256x128xf32, #tpu.memory_space<any>> -> memref<1x128xf32, #tpu.memory_space<any>>
    %c14_i32_58 = arith.constant 14 : i32
    %c0_i32_59 = arith.constant 0 : i32
    %103 = tpu.memref_slice %arg5[%c14_i32_58, %c0_i32_59] : memref<16x128xf32, #tpu.memory_space<vmem>> -> memref<1x128xf32, #tpu.memory_space<vmem>>
    %104 = tpu.memref_slice %arg6[%c14_i32_56] : memref<16x!tpu.dma_semaphore, #tpu.memory_space<semaphore_mem>> -> memref<1x!tpu.dma_semaphore, #tpu.memory_space<semaphore_mem>>
    %105 = tpu.memref_squeeze %104 : memref<1x!tpu.dma_semaphore, #tpu.memory_space<semaphore_mem>> -> memref<!tpu.dma_semaphore, #tpu.memory_space<semaphore_mem>>
    tpu.enqueue_dma source(%102 : memref<1x128xf32, #tpu.memory_space<any>>) target(%103 : memref<1x128xf32, #tpu.memory_space<vmem>>) target_semaphore(%105 : memref<!tpu.dma_semaphore, #tpu.memory_space<semaphore_mem>>)
    %c15_i32 = arith.constant 15 : i32
    %106 = arith.addi %0, %c15_i32 : i32
    %107 = arith.index_cast %106 : i32 to index
    %108 = memref.load %arg1[%107] : memref<16xi32, #tpu.memory_space<smem>>
    %c15_i32_60 = arith.constant 15 : i32
    %c0_i32_61 = arith.constant 0 : i32
    %109 = tpu.memref_slice %arg2[%108, %c0_i32_61] : memref<256x128xf32, #tpu.memory_space<any>> -> memref<1x128xf32, #tpu.memory_space<any>>
    %c15_i32_62 = arith.constant 15 : i32
    %c0_i32_63 = arith.constant 0 : i32
    %110 = tpu.memref_slice %arg5[%c15_i32_62, %c0_i32_63] : memref<16x128xf32, #tpu.memory_space<vmem>> -> memref<1x128xf32, #tpu.memory_space<vmem>>
    %111 = tpu.memref_slice %arg6[%c15_i32_60] : memref<16x!tpu.dma_semaphore, #tpu.memory_space<semaphore_mem>> -> memref<1x!tpu.dma_semaphore, #tpu.memory_space<semaphore_mem>>
    %112 = tpu.memref_squeeze %111 : memref<1x!tpu.dma_semaphore, #tpu.memory_space<semaphore_mem>> -> memref<!tpu.dma_semaphore, #tpu.memory_space<semaphore_mem>>
    tpu.enqueue_dma source(%109 : memref<1x128xf32, #tpu.memory_space<any>>) target(%110 : memref<1x128xf32, #tpu.memory_space<vmem>>) target_semaphore(%112 : memref<!tpu.dma_semaphore, #tpu.memory_space<semaphore_mem>>)
    %c0_i32_64 = arith.constant 0 : i32
    %c0_i32_65 = arith.constant 0 : i32
    %c0_i32_66 = arith.constant 0 : i32
    %113 = tpu.memref_slice %arg2[%c0_i32_65, %c0_i32_66] : memref<256x128xf32, #tpu.memory_space<any>> -> memref<1x128xf32, #tpu.memory_space<any>>
    %c0_i32_67 = arith.constant 0 : i32
    %c0_i32_68 = arith.constant 0 : i32
    %114 = tpu.memref_slice %arg5[%c0_i32_67, %c0_i32_68] : memref<16x128xf32, #tpu.memory_space<vmem>> -> memref<1x128xf32, #tpu.memory_space<vmem>>
    %115 = tpu.memref_slice %arg6[%c0_i32_64] : memref<16x!tpu.dma_semaphore, #tpu.memory_space<semaphore_mem>> -> memref<1x!tpu.dma_semaphore, #tpu.memory_space<semaphore_mem>>
    %116 = tpu.memref_squeeze %115 : memref<1x!tpu.dma_semaphore, #tpu.memory_space<semaphore_mem>> -> memref<!tpu.dma_semaphore, #tpu.memory_space<semaphore_mem>>
    tpu.wait_dma2 semaphore(%116 : memref<!tpu.dma_semaphore, #tpu.memory_space<semaphore_mem>>) src(%113 : memref<1x128xf32, #tpu.memory_space<any>>) dst(%114 : memref<1x128xf32, #tpu.memory_space<vmem>>)
    %c1_i32_69 = arith.constant 1 : i32
    %c0_i32_70 = arith.constant 0 : i32
    %c0_i32_71 = arith.constant 0 : i32
    %117 = tpu.memref_slice %arg2[%c0_i32_70, %c0_i32_71] : memref<256x128xf32, #tpu.memory_space<any>> -> memref<1x128xf32, #tpu.memory_space<any>>
    %c1_i32_72 = arith.constant 1 : i32
    %c0_i32_73 = arith.constant 0 : i32
    %118 = tpu.memref_slice %arg5[%c1_i32_72, %c0_i32_73] : memref<16x128xf32, #tpu.memory_space<vmem>> -> memref<1x128xf32, #tpu.memory_space<vmem>>
    %119 = tpu.memref_slice %arg6[%c1_i32_69] : memref<16x!tpu.dma_semaphore, #tpu.memory_space<semaphore_mem>> -> memref<1x!tpu.dma_semaphore, #tpu.memory_space<semaphore_mem>>
    %120 = tpu.memref_squeeze %119 : memref<1x!tpu.dma_semaphore, #tpu.memory_space<semaphore_mem>> -> memref<!tpu.dma_semaphore, #tpu.memory_space<semaphore_mem>>
    tpu.wait_dma2 semaphore(%120 : memref<!tpu.dma_semaphore, #tpu.memory_space<semaphore_mem>>) src(%117 : memref<1x128xf32, #tpu.memory_space<any>>) dst(%118 : memref<1x128xf32, #tpu.memory_space<vmem>>)
    %c2_i32_74 = arith.constant 2 : i32
    %c0_i32_75 = arith.constant 0 : i32
    %c0_i32_76 = arith.constant 0 : i32
    %121 = tpu.memref_slice %arg2[%c0_i32_75, %c0_i32_76] : memref<256x128xf32, #tpu.memory_space<any>> -> memref<1x128xf32, #tpu.memory_space<any>>
    %c2_i32_77 = arith.constant 2 : i32
    %c0_i32_78 = arith.constant 0 : i32
    %122 = tpu.memref_slice %arg5[%c2_i32_77, %c0_i32_78] : memref<16x128xf32, #tpu.memory_space<vmem>> -> memref<1x128xf32, #tpu.memory_space<vmem>>
    %123 = tpu.memref_slice %arg6[%c2_i32_74] : memref<16x!tpu.dma_semaphore, #tpu.memory_space<semaphore_mem>> -> memref<1x!tpu.dma_semaphore, #tpu.memory_space<semaphore_mem>>
    %124 = tpu.memref_squeeze %123 : memref<1x!tpu.dma_semaphore, #tpu.memory_space<semaphore_mem>> -> memref<!tpu.dma_semaphore, #tpu.memory_space<semaphore_mem>>
    tpu.wait_dma2 semaphore(%124 : memref<!tpu.dma_semaphore, #tpu.memory_space<semaphore_mem>>) src(%121 : memref<1x128xf32, #tpu.memory_space<any>>) dst(%122 : memref<1x128xf32, #tpu.memory_space<vmem>>)
    %c3_i32_79 = arith.constant 3 : i32
    %c0_i32_80 = arith.constant 0 : i32
    %c0_i32_81 = arith.constant 0 : i32
    %125 = tpu.memref_slice %arg2[%c0_i32_80, %c0_i32_81] : memref<256x128xf32, #tpu.memory_space<any>> -> memref<1x128xf32, #tpu.memory_space<any>>
    %c3_i32_82 = arith.constant 3 : i32
    %c0_i32_83 = arith.constant 0 : i32
    %126 = tpu.memref_slice %arg5[%c3_i32_82, %c0_i32_83] : memref<16x128xf32, #tpu.memory_space<vmem>> -> memref<1x128xf32, #tpu.memory_space<vmem>>
    %127 = tpu.memref_slice %arg6[%c3_i32_79] : memref<16x!tpu.dma_semaphore, #tpu.memory_space<semaphore_mem>> -> memref<1x!tpu.dma_semaphore, #tpu.memory_space<semaphore_mem>>
    %128 = tpu.memref_squeeze %127 : memref<1x!tpu.dma_semaphore, #tpu.memory_space<semaphore_mem>> -> memref<!tpu.dma_semaphore, #tpu.memory_space<semaphore_mem>>
    tpu.wait_dma2 semaphore(%128 : memref<!tpu.dma_semaphore, #tpu.memory_space<semaphore_mem>>) src(%125 : memref<1x128xf32, #tpu.memory_space<any>>) dst(%126 : memref<1x128xf32, #tpu.memory_space<vmem>>)
    %c4_i32_84 = arith.constant 4 : i32
    %c0_i32_85 = arith.constant 0 : i32
    %c0_i32_86 = arith.constant 0 : i32
    %129 = tpu.memref_slice %arg2[%c0_i32_85, %c0_i32_86] : memref<256x128xf32, #tpu.memory_space<any>> -> memref<1x128xf32, #tpu.memory_space<any>>
    %c4_i32_87 = arith.constant 4 : i32
    %c0_i32_88 = arith.constant 0 : i32
    %130 = tpu.memref_slice %arg5[%c4_i32_87, %c0_i32_88] : memref<16x128xf32, #tpu.memory_space<vmem>> -> memref<1x128xf32, #tpu.memory_space<vmem>>
    %131 = tpu.memref_slice %arg6[%c4_i32_84] : memref<16x!tpu.dma_semaphore, #tpu.memory_space<semaphore_mem>> -> memref<1x!tpu.dma_semaphore, #tpu.memory_space<semaphore_mem>>
    %132 = tpu.memref_squeeze %131 : memref<1x!tpu.dma_semaphore, #tpu.memory_space<semaphore_mem>> -> memref<!tpu.dma_semaphore, #tpu.memory_space<semaphore_mem>>
    tpu.wait_dma2 semaphore(%132 : memref<!tpu.dma_semaphore, #tpu.memory_space<semaphore_mem>>) src(%129 : memref<1x128xf32, #tpu.memory_space<any>>) dst(%130 : memref<1x128xf32, #tpu.memory_space<vmem>>)
    %c5_i32_89 = arith.constant 5 : i32
    %c0_i32_90 = arith.constant 0 : i32
    %c0_i32_91 = arith.constant 0 : i32
    %133 = tpu.memref_slice %arg2[%c0_i32_90, %c0_i32_91] : memref<256x128xf32, #tpu.memory_space<any>> -> memref<1x128xf32, #tpu.memory_space<any>>
    %c5_i32_92 = arith.constant 5 : i32
    %c0_i32_93 = arith.constant 0 : i32
    %134 = tpu.memref_slice %arg5[%c5_i32_92, %c0_i32_93] : memref<16x128xf32, #tpu.memory_space<vmem>> -> memref<1x128xf32, #tpu.memory_space<vmem>>
    %135 = tpu.memref_slice %arg6[%c5_i32_89] : memref<16x!tpu.dma_semaphore, #tpu.memory_space<semaphore_mem>> -> memref<1x!tpu.dma_semaphore, #tpu.memory_space<semaphore_mem>>
    %136 = tpu.memref_squeeze %135 : memref<1x!tpu.dma_semaphore, #tpu.memory_space<semaphore_mem>> -> memref<!tpu.dma_semaphore, #tpu.memory_space<semaphore_mem>>
    tpu.wait_dma2 semaphore(%136 : memref<!tpu.dma_semaphore, #tpu.memory_space<semaphore_mem>>) src(%133 : memref<1x128xf32, #tpu.memory_space<any>>) dst(%134 : memref<1x128xf32, #tpu.memory_space<vmem>>)
    %c6_i32_94 = arith.constant 6 : i32
    %c0_i32_95 = arith.constant 0 : i32
    %c0_i32_96 = arith.constant 0 : i32
    %137 = tpu.memref_slice %arg2[%c0_i32_95, %c0_i32_96] : memref<256x128xf32, #tpu.memory_space<any>> -> memref<1x128xf32, #tpu.memory_space<any>>
    %c6_i32_97 = arith.constant 6 : i32
    %c0_i32_98 = arith.constant 0 : i32
    %138 = tpu.memref_slice %arg5[%c6_i32_97, %c0_i32_98] : memref<16x128xf32, #tpu.memory_space<vmem>> -> memref<1x128xf32, #tpu.memory_space<vmem>>
    %139 = tpu.memref_slice %arg6[%c6_i32_94] : memref<16x!tpu.dma_semaphore, #tpu.memory_space<semaphore_mem>> -> memref<1x!tpu.dma_semaphore, #tpu.memory_space<semaphore_mem>>
    %140 = tpu.memref_squeeze %139 : memref<1x!tpu.dma_semaphore, #tpu.memory_space<semaphore_mem>> -> memref<!tpu.dma_semaphore, #tpu.memory_space<semaphore_mem>>
    tpu.wait_dma2 semaphore(%140 : memref<!tpu.dma_semaphore, #tpu.memory_space<semaphore_mem>>) src(%137 : memref<1x128xf32, #tpu.memory_space<any>>) dst(%138 : memref<1x128xf32, #tpu.memory_space<vmem>>)
    %c7_i32_99 = arith.constant 7 : i32
    %c0_i32_100 = arith.constant 0 : i32
    %c0_i32_101 = arith.constant 0 : i32
    %141 = tpu.memref_slice %arg2[%c0_i32_100, %c0_i32_101] : memref<256x128xf32, #tpu.memory_space<any>> -> memref<1x128xf32, #tpu.memory_space<any>>
    %c7_i32_102 = arith.constant 7 : i32
    %c0_i32_103 = arith.constant 0 : i32
    %142 = tpu.memref_slice %arg5[%c7_i32_102, %c0_i32_103] : memref<16x128xf32, #tpu.memory_space<vmem>> -> memref<1x128xf32, #tpu.memory_space<vmem>>
    %143 = tpu.memref_slice %arg6[%c7_i32_99] : memref<16x!tpu.dma_semaphore, #tpu.memory_space<semaphore_mem>> -> memref<1x!tpu.dma_semaphore, #tpu.memory_space<semaphore_mem>>
    %144 = tpu.memref_squeeze %143 : memref<1x!tpu.dma_semaphore, #tpu.memory_space<semaphore_mem>> -> memref<!tpu.dma_semaphore, #tpu.memory_space<semaphore_mem>>
    tpu.wait_dma2 semaphore(%144 : memref<!tpu.dma_semaphore, #tpu.memory_space<semaphore_mem>>) src(%141 : memref<1x128xf32, #tpu.memory_space<any>>) dst(%142 : memref<1x128xf32, #tpu.memory_space<vmem>>)
    %c8_i32_104 = arith.constant 8 : i32
    %c0_i32_105 = arith.constant 0 : i32
    %c0_i32_106 = arith.constant 0 : i32
    %145 = tpu.memref_slice %arg2[%c0_i32_105, %c0_i32_106] : memref<256x128xf32, #tpu.memory_space<any>> -> memref<1x128xf32, #tpu.memory_space<any>>
    %c8_i32_107 = arith.constant 8 : i32
    %c0_i32_108 = arith.constant 0 : i32
    %146 = tpu.memref_slice %arg5[%c8_i32_107, %c0_i32_108] : memref<16x128xf32, #tpu.memory_space<vmem>> -> memref<1x128xf32, #tpu.memory_space<vmem>>
    %147 = tpu.memref_slice %arg6[%c8_i32_104] : memref<16x!tpu.dma_semaphore, #tpu.memory_space<semaphore_mem>> -> memref<1x!tpu.dma_semaphore, #tpu.memory_space<semaphore_mem>>
    %148 = tpu.memref_squeeze %147 : memref<1x!tpu.dma_semaphore, #tpu.memory_space<semaphore_mem>> -> memref<!tpu.dma_semaphore, #tpu.memory_space<semaphore_mem>>
    tpu.wait_dma2 semaphore(%148 : memref<!tpu.dma_semaphore, #tpu.memory_space<semaphore_mem>>) src(%145 : memref<1x128xf32, #tpu.memory_space<any>>) dst(%146 : memref<1x128xf32, #tpu.memory_space<vmem>>)
    %c9_i32_109 = arith.constant 9 : i32
    %c0_i32_110 = arith.constant 0 : i32
    %c0_i32_111 = arith.constant 0 : i32
    %149 = tpu.memref_slice %arg2[%c0_i32_110, %c0_i32_111] : memref<256x128xf32, #tpu.memory_space<any>> -> memref<1x128xf32, #tpu.memory_space<any>>
    %c9_i32_112 = arith.constant 9 : i32
    %c0_i32_113 = arith.constant 0 : i32
    %150 = tpu.memref_slice %arg5[%c9_i32_112, %c0_i32_113] : memref<16x128xf32, #tpu.memory_space<vmem>> -> memref<1x128xf32, #tpu.memory_space<vmem>>
    %151 = tpu.memref_slice %arg6[%c9_i32_109] : memref<16x!tpu.dma_semaphore, #tpu.memory_space<semaphore_mem>> -> memref<1x!tpu.dma_semaphore, #tpu.memory_space<semaphore_mem>>
    %152 = tpu.memref_squeeze %151 : memref<1x!tpu.dma_semaphore, #tpu.memory_space<semaphore_mem>> -> memref<!tpu.dma_semaphore, #tpu.memory_space<semaphore_mem>>
    tpu.wait_dma2 semaphore(%152 : memref<!tpu.dma_semaphore, #tpu.memory_space<semaphore_mem>>) src(%149 : memref<1x128xf32, #tpu.memory_space<any>>) dst(%150 : memref<1x128xf32, #tpu.memory_space<vmem>>)
    %c10_i32_114 = arith.constant 10 : i32
    %c0_i32_115 = arith.constant 0 : i32
    %c0_i32_116 = arith.constant 0 : i32
    %153 = tpu.memref_slice %arg2[%c0_i32_115, %c0_i32_116] : memref<256x128xf32, #tpu.memory_space<any>> -> memref<1x128xf32, #tpu.memory_space<any>>
    %c10_i32_117 = arith.constant 10 : i32
    %c0_i32_118 = arith.constant 0 : i32
    %154 = tpu.memref_slice %arg5[%c10_i32_117, %c0_i32_118] : memref<16x128xf32, #tpu.memory_space<vmem>> -> memref<1x128xf32, #tpu.memory_space<vmem>>
    %155 = tpu.memref_slice %arg6[%c10_i32_114] : memref<16x!tpu.dma_semaphore, #tpu.memory_space<semaphore_mem>> -> memref<1x!tpu.dma_semaphore, #tpu.memory_space<semaphore_mem>>
    %156 = tpu.memref_squeeze %155 : memref<1x!tpu.dma_semaphore, #tpu.memory_space<semaphore_mem>> -> memref<!tpu.dma_semaphore, #tpu.memory_space<semaphore_mem>>
    tpu.wait_dma2 semaphore(%156 : memref<!tpu.dma_semaphore, #tpu.memory_space<semaphore_mem>>) src(%153 : memref<1x128xf32, #tpu.memory_space<any>>) dst(%154 : memref<1x128xf32, #tpu.memory_space<vmem>>)
    %c11_i32_119 = arith.constant 11 : i32
    %c0_i32_120 = arith.constant 0 : i32
    %c0_i32_121 = arith.constant 0 : i32
    %157 = tpu.memref_slice %arg2[%c0_i32_120, %c0_i32_121] : memref<256x128xf32, #tpu.memory_space<any>> -> memref<1x128xf32, #tpu.memory_space<any>>
    %c11_i32_122 = arith.constant 11 : i32
    %c0_i32_123 = arith.constant 0 : i32
    %158 = tpu.memref_slice %arg5[%c11_i32_122, %c0_i32_123] : memref<16x128xf32, #tpu.memory_space<vmem>> -> memref<1x128xf32, #tpu.memory_space<vmem>>
    %159 = tpu.memref_slice %arg6[%c11_i32_119] : memref<16x!tpu.dma_semaphore, #tpu.memory_space<semaphore_mem>> -> memref<1x!tpu.dma_semaphore, #tpu.memory_space<semaphore_mem>>
    %160 = tpu.memref_squeeze %159 : memref<1x!tpu.dma_semaphore, #tpu.memory_space<semaphore_mem>> -> memref<!tpu.dma_semaphore, #tpu.memory_space<semaphore_mem>>
    tpu.wait_dma2 semaphore(%160 : memref<!tpu.dma_semaphore, #tpu.memory_space<semaphore_mem>>) src(%157 : memref<1x128xf32, #tpu.memory_space<any>>) dst(%158 : memref<1x128xf32, #tpu.memory_space<vmem>>)
    %c12_i32_124 = arith.constant 12 : i32
    %c0_i32_125 = arith.constant 0 : i32
    %c0_i32_126 = arith.constant 0 : i32
    %161 = tpu.memref_slice %arg2[%c0_i32_125, %c0_i32_126] : memref<256x128xf32, #tpu.memory_space<any>> -> memref<1x128xf32, #tpu.memory_space<any>>
    %c12_i32_127 = arith.constant 12 : i32
    %c0_i32_128 = arith.constant 0 : i32
    %162 = tpu.memref_slice %arg5[%c12_i32_127, %c0_i32_128] : memref<16x128xf32, #tpu.memory_space<vmem>> -> memref<1x128xf32, #tpu.memory_space<vmem>>
    %163 = tpu.memref_slice %arg6[%c12_i32_124] : memref<16x!tpu.dma_semaphore, #tpu.memory_space<semaphore_mem>> -> memref<1x!tpu.dma_semaphore, #tpu.memory_space<semaphore_mem>>
    %164 = tpu.memref_squeeze %163 : memref<1x!tpu.dma_semaphore, #tpu.memory_space<semaphore_mem>> -> memref<!tpu.dma_semaphore, #tpu.memory_space<semaphore_mem>>
    tpu.wait_dma2 semaphore(%164 : memref<!tpu.dma_semaphore, #tpu.memory_space<semaphore_mem>>) src(%161 : memref<1x128xf32, #tpu.memory_space<any>>) dst(%162 : memref<1x128xf32, #tpu.memory_space<vmem>>)
    %c13_i32_129 = arith.constant 13 : i32
    %c0_i32_130 = arith.constant 0 : i32
    %c0_i32_131 = arith.constant 0 : i32
    %165 = tpu.memref_slice %arg2[%c0_i32_130, %c0_i32_131] : memref<256x128xf32, #tpu.memory_space<any>> -> memref<1x128xf32, #tpu.memory_space<any>>
    %c13_i32_132 = arith.constant 13 : i32
    %c0_i32_133 = arith.constant 0 : i32
    %166 = tpu.memref_slice %arg5[%c13_i32_132, %c0_i32_133] : memref<16x128xf32, #tpu.memory_space<vmem>> -> memref<1x128xf32, #tpu.memory_space<vmem>>
    %167 = tpu.memref_slice %arg6[%c13_i32_129] : memref<16x!tpu.dma_semaphore, #tpu.memory_space<semaphore_mem>> -> memref<1x!tpu.dma_semaphore, #tpu.memory_space<semaphore_mem>>
    %168 = tpu.memref_squeeze %167 : memref<1x!tpu.dma_semaphore, #tpu.memory_space<semaphore_mem>> -> memref<!tpu.dma_semaphore, #tpu.memory_space<semaphore_mem>>
    tpu.wait_dma2 semaphore(%168 : memref<!tpu.dma_semaphore, #tpu.memory_space<semaphore_mem>>) src(%165 : memref<1x128xf32, #tpu.memory_space<any>>) dst(%166 : memref<1x128xf32, #tpu.memory_space<vmem>>)
    %c14_i32_134 = arith.constant 14 : i32
    %c0_i32_135 = arith.constant 0 : i32
    %c0_i32_136 = arith.constant 0 : i32
    %169 = tpu.memref_slice %arg2[%c0_i32_135, %c0_i32_136] : memref<256x128xf32, #tpu.memory_space<any>> -> memref<1x128xf32, #tpu.memory_space<any>>
    %c14_i32_137 = arith.constant 14 : i32
    %c0_i32_138 = arith.constant 0 : i32
    %170 = tpu.memref_slice %arg5[%c14_i32_137, %c0_i32_138] : memref<16x128xf32, #tpu.memory_space<vmem>> -> memref<1x128xf32, #tpu.memory_space<vmem>>
    %171 = tpu.memref_slice %arg6[%c14_i32_134] : memref<16x!tpu.dma_semaphore, #tpu.memory_space<semaphore_mem>> -> memref<1x!tpu.dma_semaphore, #tpu.memory_space<semaphore_mem>>
    %172 = tpu.memref_squeeze %171 : memref<1x!tpu.dma_semaphore, #tpu.memory_space<semaphore_mem>> -> memref<!tpu.dma_semaphore, #tpu.memory_space<semaphore_mem>>
    tpu.wait_dma2 semaphore(%172 : memref<!tpu.dma_semaphore, #tpu.memory_space<semaphore_mem>>) src(%169 : memref<1x128xf32, #tpu.memory_space<any>>) dst(%170 : memref<1x128xf32, #tpu.memory_space<vmem>>)
    %c15_i32_139 = arith.constant 15 : i32
    %c0_i32_140 = arith.constant 0 : i32
    %c0_i32_141 = arith.constant 0 : i32
    %173 = tpu.memref_slice %arg2[%c0_i32_140, %c0_i32_141] : memref<256x128xf32, #tpu.memory_space<any>> -> memref<1x128xf32, #tpu.memory_space<any>>
    %c15_i32_142 = arith.constant 15 : i32
    %c0_i32_143 = arith.constant 0 : i32
    %174 = tpu.memref_slice %arg5[%c15_i32_142, %c0_i32_143] : memref<16x128xf32, #tpu.memory_space<vmem>> -> memref<1x128xf32, #tpu.memory_space<vmem>>
    %175 = tpu.memref_slice %arg6[%c15_i32_139] : memref<16x!tpu.dma_semaphore, #tpu.memory_space<semaphore_mem>> -> memref<1x!tpu.dma_semaphore, #tpu.memory_space<semaphore_mem>>
    %176 = tpu.memref_squeeze %175 : memref<1x!tpu.dma_semaphore, #tpu.memory_space<semaphore_mem>> -> memref<!tpu.dma_semaphore, #tpu.memory_space<semaphore_mem>>
    tpu.wait_dma2 semaphore(%176 : memref<!tpu.dma_semaphore, #tpu.memory_space<semaphore_mem>>) src(%173 : memref<1x128xf32, #tpu.memory_space<any>>) dst(%174 : memref<1x128xf32, #tpu.memory_space<vmem>>)
    %c0 = arith.constant 0 : index
    %c0_144 = arith.constant 0 : index
    %177 = vector.load %arg5[%c0, %c0_144] : memref<16x128xf32, #tpu.memory_space<vmem>>, vector<2x128xf32>
    %cst = arith.constant 11.3137083 : f32
    %178 = vector.broadcast %cst : f32 to vector<2x128xf32>
    %179 = arith.mulf %177, %178 : vector<2x128xf32>
    %c0_145 = arith.constant 0 : index
    %c0_146 = arith.constant 0 : index
    %180 = vector.load %arg3[%c0_145, %c0_146] : memref<8x128xf32, #tpu.memory_space<vmem>>, vector<1x128xf32>
    %181 = vector.broadcast %180 : vector<1x128xf32> to vector<2x128xf32>
    %182 = arith.addf %179, %181 : vector<2x128xf32>
    %c0_147 = arith.constant 0 : index
    %c0_148 = arith.constant 0 : index
    %183 = vector.load %arg4[%c0_147, %c0_148] : memref<16x128xf32, #tpu.memory_space<vmem>>, vector<2x128xf32>
    tpu.vector_store %arg4[%c0_147, %c0_148], %182 {strides = array<i32>} : memref<16x128xf32, #tpu.memory_space<vmem>>, vector<2x128xf32>,
    %c2 = arith.constant 2 : index
    %c0_149 = arith.constant 0 : index
    %184 = vector.load %arg5[%c2, %c0_149] : memref<16x128xf32, #tpu.memory_space<vmem>>, vector<2x128xf32>
    %cst_150 = arith.constant 11.3137083 : f32
    %185 = vector.broadcast %cst_150 : f32 to vector<2x128xf32>
    %186 = arith.mulf %184, %185 : vector<2x128xf32>
    %c1 = arith.constant 1 : index
    %c0_151 = arith.constant 0 : index
    %187 = vector.load %arg3[%c1, %c0_151] : memref<8x128xf32, #tpu.memory_space<vmem>>, vector<1x128xf32>
    %188 = vector.broadcast %187 : vector<1x128xf32> to vector<2x128xf32>
    %189 = arith.addf %186, %188 : vector<2x128xf32>
    %c2_152 = arith.constant 2 : index
    %c0_153 = arith.constant 0 : index
    %190 = vector.load %arg4[%c2_152, %c0_153] : memref<16x128xf32, #tpu.memory_space<vmem>>, vector<2x128xf32>
    tpu.vector_store %arg4[%c2_152, %c0_153], %189 {strides = array<i32>} : memref<16x128xf32, #tpu.memory_space<vmem>>, vector<2x128xf32>,
    %c4 = arith.constant 4 : index
    %c0_154 = arith.constant 0 : index
    %191 = vector.load %arg5[%c4, %c0_154] : memref<16x128xf32, #tpu.memory_space<vmem>>, vector<2x128xf32>
    %cst_155 = arith.constant 11.3137083 : f32
    %192 = vector.broadcast %cst_155 : f32 to vector<2x128xf32>
    %193 = arith.mulf %191, %192 : vector<2x128xf32>
    %c2_156 = arith.constant 2 : index
    %c0_157 = arith.constant 0 : index
    %194 = vector.load %arg3[%c2_156, %c0_157] : memref<8x128xf32, #tpu.memory_space<vmem>>, vector<1x128xf32>
    %195 = vector.broadcast %194 : vector<1x128xf32> to vector<2x128xf32>
    %196 = arith.addf %193, %195 : vector<2x128xf32>
    %c4_158 = arith.constant 4 : index
    %c0_159 = arith.constant 0 : index
    %197 = vector.load %arg4[%c4_158, %c0_159] : memref<16x128xf32, #tpu.memory_space<vmem>>, vector<2x128xf32>
    tpu.vector_store %arg4[%c4_158, %c0_159], %196 {strides = array<i32>} : memref<16x128xf32, #tpu.memory_space<vmem>>, vector<2x128xf32>,
    %c6 = arith.constant 6 : index
    %c0_160 = arith.constant 0 : index
    %198 = vector.load %arg5[%c6, %c0_160] : memref<16x128xf32, #tpu.memory_space<vmem>>, vector<2x128xf32>
    %cst_161 = arith.constant 11.3137083 : f32
    %199 = vector.broadcast %cst_161 : f32 to vector<2x128xf32>
    %200 = arith.mulf %198, %199 : vector<2x128xf32>
    %c3 = arith.constant 3 : index
    %c0_162 = arith.constant 0 : index
    %201 = vector.load %arg3[%c3, %c0_162] : memref<8x128xf32, #tpu.memory_space<vmem>>, vector<1x128xf32>
    %202 = vector.broadcast %201 : vector<1x128xf32> to vector<2x128xf32>
    %203 = arith.addf %200, %202 : vector<2x128xf32>
    %c6_163 = arith.constant 6 : index
    %c0_164 = arith.constant 0 : index
    %204 = vector.load %arg4[%c6_163, %c0_164] : memref<16x128xf32, #tpu.memory_space<vmem>>, vector<2x128xf32>
    tpu.vector_store %arg4[%c6_163, %c0_164], %203 {strides = array<i32>} : memref<16x128xf32, #tpu.memory_space<vmem>>, vector<2x128xf32>,
    %c8 = arith.constant 8 : index
    %c0_165 = arith.constant 0 : index
    %205 = vector.load %arg5[%c8, %c0_165] : memref<16x128xf32, #tpu.memory_space<vmem>>, vector<2x128xf32>
    %cst_166 = arith.constant 11.3137083 : f32
    %206 = vector.broadcast %cst_166 : f32 to vector<2x128xf32>
    %207 = arith.mulf %205, %206 : vector<2x128xf32>
    %c4_167 = arith.constant 4 : index
    %c0_168 = arith.constant 0 : index
    %208 = vector.load %arg3[%c4_167, %c0_168] : memref<8x128xf32, #tpu.memory_space<vmem>>, vector<1x128xf32>
    %209 = vector.broadcast %208 : vector<1x128xf32> to vector<2x128xf32>
    %210 = arith.addf %207, %209 : vector<2x128xf32>
    %c8_169 = arith.constant 8 : index
    %c0_170 = arith.constant 0 : index
    %211 = vector.load %arg4[%c8_169, %c0_170] : memref<16x128xf32, #tpu.memory_space<vmem>>, vector<2x128xf32>
    tpu.vector_store %arg4[%c8_169, %c0_170], %210 {strides = array<i32>} : memref<16x128xf32, #tpu.memory_space<vmem>>, vector<2x128xf32>,
    %c10 = arith.constant 10 : index
    %c0_171 = arith.constant 0 : index
    %212 = vector.load %arg5[%c10, %c0_171] : memref<16x128xf32, #tpu.memory_space<vmem>>, vector<2x128xf32>
    %cst_172 = arith.constant 11.3137083 : f32
    %213 = vector.broadcast %cst_172 : f32 to vector<2x128xf32>
    %214 = arith.mulf %212, %213 : vector<2x128xf32>
    %c5 = arith.constant 5 : index
    %c0_173 = arith.constant 0 : index
    %215 = vector.load %arg3[%c5, %c0_173] : memref<8x128xf32, #tpu.memory_space<vmem>>, vector<1x128xf32>
    %216 = vector.broadcast %215 : vector<1x128xf32> to vector<2x128xf32>
    %217 = arith.addf %214, %216 : vector<2x128xf32>
    %c10_174 = arith.constant 10 : index
    %c0_175 = arith.constant 0 : index
    %218 = vector.load %arg4[%c10_174, %c0_175] : memref<16x128xf32, #tpu.memory_space<vmem>>, vector<2x128xf32>
    tpu.vector_store %arg4[%c10_174, %c0_175], %217 {strides = array<i32>} : memref<16x128xf32, #tpu.memory_space<vmem>>, vector<2x128xf32>,
    %c12 = arith.constant 12 : index
    %c0_176 = arith.constant 0 : index
    %219 = vector.load %arg5[%c12, %c0_176] : memref<16x128xf32, #tpu.memory_space<vmem>>, vector<2x128xf32>
    %cst_177 = arith.constant 11.3137083 : f32
    %220 = vector.broadcast %cst_177 : f32 to vector<2x128xf32>
    %221 = arith.mulf %219, %220 : vector<2x128xf32>
    %c6_178 = arith.constant 6 : index
    %c0_179 = arith.constant 0 : index
    %222 = vector.load %arg3[%c6_178, %c0_179] : memref<8x128xf32, #tpu.memory_space<vmem>>, vector<1x128xf32>
    %223 = vector.broadcast %222 : vector<1x128xf32> to vector<2x128xf32>
    %224 = arith.addf %221, %223 : vector<2x128xf32>
    %c12_180 = arith.constant 12 : index
    %c0_181 = arith.constant 0 : index
    %225 = vector.load %arg4[%c12_180, %c0_181] : memref<16x128xf32, #tpu.memory_space<vmem>>, vector<2x128xf32>
    tpu.vector_store %arg4[%c12_180, %c0_181], %224 {strides = array<i32>} : memref<16x128xf32, #tpu.memory_space<vmem>>, vector<2x128xf32>,
    %c14 = arith.constant 14 : index
    %c0_182 = arith.constant 0 : index
    %226 = vector.load %arg5[%c14, %c0_182] : memref<16x128xf32, #tpu.memory_space<vmem>>, vector<2x128xf32>
    %cst_183 = arith.constant 11.3137083 : f32
    %227 = vector.broadcast %cst_183 : f32 to vector<2x128xf32>
    %228 = arith.mulf %226, %227 : vector<2x128xf32>
    %c7 = arith.constant 7 : index
    %c0_184 = arith.constant 0 : index
    %229 = vector.load %arg3[%c7, %c0_184] : memref<8x128xf32, #tpu.memory_space<vmem>>, vector<1x128xf32>
    %230 = vector.broadcast %229 : vector<1x128xf32> to vector<2x128xf32>
    %231 = arith.addf %228, %230 : vector<2x128xf32>
    %c14_185 = arith.constant 14 : index
    %c0_186 = arith.constant 0 : index
    %232 = vector.load %arg4[%c14_185, %c0_186] : memref<16x128xf32, #tpu.memory_space<vmem>>, vector<2x128xf32>
    tpu.vector_store %arg4[%c14_185, %c0_186], %231 {strides = array<i32>} : memref<16x128xf32, #tpu.memory_space<vmem>>, vector<2x128xf32>,
    return
  }
  func.func @transform_1(%arg0: i32, %arg1: memref<16xi32, #tpu.memory_space<smem>>) -> (i32, i32) {
    %c0_i32 = arith.constant 0 : i32
    %c0_i32_0 = arith.constant 0 : i32
    return %arg0, %c0_i32 : i32, i32
  }
  func.func @transform_2(%arg0: i32, %arg1: memref<16xi32, #tpu.memory_space<smem>>) -> (i32, i32) {
    %c0_i32 = arith.constant 0 : i32
    %c0_i32_0 = arith.constant 0 : i32
    return %arg0, %c0_i32 : i32, i32
  }
}

</mosaic_0001>

<bundles_post_ra>
// kernel: tpu_custom_call.1
= control target key start
LH: loop header
LB: loop body
LE: loop exit
PB: predicated region body
PF: predicated region fallthrough
CT: control target
= control target key end

     0   :  { %s1076_s12 = smov [#allocation5]   ;;  %s1368_s0 = inlined_call_operand.hbm [shape: s32[16], index: 0, kind: input, shape index: {}]   ;;  %s1369_s1 = inlined_call_operand.hbm [shape: f32[256,128], index: 1, kind: input, shape index: {}]   ;;  %s1370_s2 = inlined_call_operand.hbm [shape: f32[8,128], index: 2, kind: input, shape index: {}]   ;;  %s1371_s3 = inlined_call_operand.hbm [shape: f32[16,128], index: 3, kind: output, shape index: {}]  }
   0x1   :  { %9 = dma.hbm_to_smem %s1368_s0, 16, %s1076_s12, [#allocation4] }
   0x2   :  { %1038 = dma.done.wait [#allocation4], 16 }
   0x3   :  { %1039 = vsyncadd [#allocation4], 4294967280 }
   0x4   :  { %11 = sfence }
   0x5   :  { %12 = vsyncpa [#allocation7], 0 }
   0x6   :  { %13 = vsyncpa [#allocation8], 0  ;;  %s1077_s15 = smov [#allocation6]  }
   0x7   :  { %s20_s16 = sshll.u32 %s1077_s15, 4  ;;  %s21_s16 = int_to_ptr.vmem [resolvable:$true] %s20_s16 }
   0x8   :  { %s654_s17 = scalar_lea.vmem %s21_s16, 128  ;;  %p659_p1 = scmp.lt.s32.totalorder %s21_s16, %s21_s16 }
   0x9   :  { %p655_p0 = scmp.ne.s32.totalorder %s21_s16, %s654_s17  ;;  %p660_p2 = scmp.lt.s32.totalorder %s654_s17, %s654_s17 }
   0xb   :  { %p661_p3 = por %p660_p2, %p659_p1 }
   0xd   :  { %p662_p4 = pnand %p661_p3, %p655_p0 }
   0xf   :  { %665 = shalt.err (!%p662_p4)
}
  0x10   :  { %23 = dma.hbm_to_vmem [thread:$0]  %s1370_s2, 128, %s21_s16, [#allocation7]  }
  0x11   :  { %1040 = dma.done.wait [#allocation7], 128  }
  0x12   :  { %1041 = vsyncadd [#allocation7], 4294967168  ;;  %s28_s0 = sld [smem:[#allocation5]]  ;;  %s1078_s20 = smov [#allocation2]  }
  0x13   :  { %s38_s21 = sshll.u32 %s1078_s20, 4  ;;  %s1125_s22 = sld [smem:[#allocation5 + $0x1]]  ;;  %s1123_s21 = int_to_ptr.vmem [resolvable:$true] %s38_s21 }
  0x14   :  { %s1079_s23 = smov [#allocation2 + $0x1]   ;;  %s1127_s25 = sld [smem:[#allocation5 + $0x2]] }
  0x15   :  { %s55_s24 = sshll.u32 %s1079_s23, 4  ;;  %s1080_s26 = smov [#allocation2 + $0x2]   ;;  %s1129_s24 = int_to_ptr.vmem [resolvable:$true] %s55_s24 }
  0x16   :  { %s72_s27 = sshll.u32 %s1080_s26, 4  ;;  %s1131_s28 = sld [smem:[#allocation5 + $0x3]]  ;;  %s1133_s27 = int_to_ptr.vmem [resolvable:$true] %s72_s27 }
  0x17   :  { %s1081_s29 = smov [#allocation2 + $0x3]   ;;  %s1144_s11 = scalar_lea.hbm %s1369_s1, 4096 }
  0x18   :  { %s562_s2 = sshll.u32 %s28_s0, 4  ;;  %s1135_s30 = sshll.u32 %s1081_s29, 4  ;;  %s90_s30 = int_to_ptr.vmem [resolvable:$true] %s1135_s30 }
  0x19   :  { %s30_s6 = scalar_lea.hbm %s1369_s1, %s562_s2  ;;  %s564_s7 = sshll.u32 %s1125_s22, 4 }
  0x1a   :  { %s666_s8 = scalar_lea.hbm %s30_s6, 16  ;;  %p669_p6 = scmp.lt.s32.totalorder %s30_s6, %s1369_s1 }
  0x1b   :  { %p667_p5 = scmp.ne.s32.totalorder %s30_s6, %s666_s8  ;;  %p670_p7 = scmp.lt.s32.totalorder %s1144_s11, %s666_s8 }
  0x1d   :  { %p671_p8 = por %p670_p7, %p669_p6 }
  0x1f   :  { %p672_p9 = pnand %p671_p8, %p667_p5 }
  0x21   :  { %675 = shalt.err (!%p672_p9)  }
  0x22   :  { %s676_s14 = scalar_lea.vmem %s1123_s21, 16  ;;  %s1153_s15 = scalar_lea.vmem %s1123_s21, 256 }
  0x23   :  { %p677_p10 = scmp.ne.s32.totalorder %s1123_s21, %s676_s14  ;;  %p681_p11 = scmp.lt.s32.totalorder %s1123_s21, %s1123_s21 }
  0x24   :  { %p682_p12 = scmp.lt.s32.totalorder %s1153_s15, %s676_s14 }
  0x26   :  { %p683_p13 = por %p682_p12, %p681_p11 }
  0x28   :  { %p684_p0 = pnand %p683_p13, %p677_p10 }
  0x2a   :  { %687 = shalt.err (!%p684_p0)  }
  0x2b   :  { %41 = dma.hbm_to_vmem [thread:$0]  %s30_s6, 16, %s1123_s21, [#allocation3] }
  0x2c   :  { %s45_s18 = scalar_lea.hbm %s1369_s1, %s564_s7  ;;  %s566_s19 = sshll.u32 %s1127_s25, 4 }
  0x2d   :  { %s688_s0 = scalar_lea.hbm %s45_s18, 16  ;;  %p691_p2 = scmp.lt.s32.totalorder %s45_s18, %s1369_s1 }
  0x2e   :  { %p689_p1 = scmp.ne.s32.totalorder %s45_s18, %s688_s0  ;;  %p692_p3 = scmp.lt.s32.totalorder %s1144_s11, %s688_s0 }
  0x30   :  { %p693_p4 = por %p692_p3, %p691_p2 }
  0x32   :  { %p694_p5 = pnand %p693_p4, %p689_p1 }
  0x34   :  { %697 = shalt.err (!%p694_p5)  }
  0x35   :  { %s698_s23 = scalar_lea.vmem %s1129_s24, 16  ;;  %p703_p7 = scmp.lt.s32.totalorder %s1129_s24, %s1123_s21 }
  0x36   :  { %p699_p6 = scmp.ne.s32.totalorder %s1129_s24, %s698_s23  ;;  %p704_p8 = scmp.lt.s32.totalorder %s1153_s15, %s698_s23 }
  0x38   :  { %p705_p9 = por %p704_p8, %p703_p7 }
  0x3a   :  { %p706_p10 = pnand %p705_p9, %p699_p6 }
  0x3c   :  { %709 = shalt.err (!%p706_p10)  }
  0x3d   :  { %58 = dma.hbm_to_vmem [thread:$0]  %s45_s18, 16, %s1129_s24, [#allocation3 + $0x1] }
  0x3e   :  { %s62_s2 = scalar_lea.hbm %s1369_s1, %s566_s19  ;;  %s568_s29 = sshll.u32 %s1131_s28, 4 }
  0x3f   :  { %s710_s4 = scalar_lea.hbm %s62_s2, 16  ;;  %p713_p12 = scmp.lt.s32.totalorder %s62_s2, %s1369_s1 }
  0x40   :  { %p711_p11 = scmp.ne.s32.totalorder %s62_s2, %s710_s4  ;;  %p714_p13 = scmp.lt.s32.totalorder %s1144_s11, %s710_s4 }
  0x42   :  { %p715_p0 = por %p714_p13, %p713_p12 }
  0x44   :  { %p716_p1 = pnand %p715_p0, %p711_p11 }
  0x46   :  { %719 = shalt.err (!%p716_p1)  }
  0x47   :  { %s720_s24 = scalar_lea.vmem %s1133_s27, 16  ;;  %p725_p3 = scmp.lt.s32.totalorder %s1133_s27, %s1123_s21 }
  0x48   :  { %p721_p2 = scmp.ne.s32.totalorder %s1133_s27, %s720_s24  ;;  %p726_p4 = scmp.lt.s32.totalorder %s1153_s15, %s720_s24 }
  0x4a   :  { %p727_p5 = por %p726_p4, %p725_p3 }
  0x4c   :  { %p728_p6 = pnand %p727_p5, %p721_p2 }
  0x4e   :  { %731 = shalt.err (!%p728_p6)  }
  0x4f   :  { %75 = dma.hbm_to_vmem [thread:$0]  %s62_s2, 16, %s1133_s27, [#allocation3 + $0x2] }
  0x50   :  { %s79_s8 = scalar_lea.hbm %s1369_s1, %s568_s29 }
  0x51   :  { %s732_s9 = scalar_lea.hbm %s79_s8, 16  ;;  %p735_p8 = scmp.lt.s32.totalorder %s79_s8, %s1369_s1 }
  0x52   :  { %p733_p7 = scmp.ne.s32.totalorder %s79_s8, %s732_s9  ;;  %p736_p9 = scmp.lt.s32.totalorder %s1144_s11, %s732_s9 }
  0x54   :  { %p737_p10 = por %p736_p9, %p735_p8 }
  0x56   :  { %p738_p11 = pnand %p737_p10, %p733_p7 }
  0x58   :  { %741 = shalt.err (!%p738_p11)  }
  0x59   :  { %s742_s13 = scalar_lea.vmem %s90_s30, 16  ;;  %p747_p13 = scmp.lt.s32.totalorder %s90_s30, %s1123_s21 }
  0x5a   :  { %p743_p12 = scmp.ne.s32.totalorder %s90_s30, %s742_s13  ;;  %p748_p0 = scmp.lt.s32.totalorder %s1153_s15, %s742_s13 }
  0x5c   :  { %p749_p1 = por %p748_p0, %p747_p13 }
  0x5e   :  { %p750_p2 = pnand %p749_p1, %p743_p12 }
  0x60   :  { %753 = shalt.err (!%p750_p2)  }
  0x61   :  { %92 = dma.hbm_to_vmem [thread:$0]  %s79_s8, 16, %s90_s30, [#allocation3 + $0x3] }
  0x62   :  { %s569_s27 = sld [smem:[#allocation5 + $0x4]]  ;;  %s1082_s14 = smov [#allocation2 + $0x4]  }
  0x63   :  { %s106_s16 = sshll.u32 %s1082_s14, 4  ;;  %s1197_s17 = sld [smem:[#allocation5 + $0x5]]  ;;  %s107_s16 = int_to_ptr.vmem [resolvable:$true] %s106_s16 }
  0x64   :  { %s1083_s18 = smov [#allocation2 + $0x5]   ;;  %s1199_s0 = sld [smem:[#allocation5 + $0x6]] }
  0x65   :  { %s123_s19 = sshll.u32 %s1083_s18, 4  ;;  %s1084_s20 = smov [#allocation2 + $0x6]   ;;  %s1201_s19 = int_to_ptr.vmem [resolvable:$true] %s123_s19 }
  0x66   :  { %s140_s22 = sshll.u32 %s1084_s20, 4  ;;  %s1203_s23 = sld [smem:[#allocation5 + $0x7]]  ;;  %s1205_s22 = int_to_ptr.vmem [resolvable:$true] %s140_s22 }
  0x68   :  { %s570_s25 = sshll.u32 %s569_s27, 4 }
  0x69   :  { %s96_s2 = scalar_lea.hbm %s1369_s1, %s570_s25  ;;  %s572_s29 = sshll.u32 %s1197_s17, 4 }
  0x6a   :  { %s754_s4 = scalar_lea.hbm %s96_s2, 16  ;;  %p757_p4 = scmp.lt.s32.totalorder %s96_s2, %s1369_s1 }
  0x6b   :  { %p755_p3 = scmp.ne.s32.totalorder %s96_s2, %s754_s4  ;;  %p758_p5 = scmp.lt.s32.totalorder %s1144_s11, %s754_s4 }
  0x6d   :  { %p759_p6 = por %p758_p5, %p757_p4 }
  0x6f   :  { %p760_p7 = pnand %p759_p6, %p755_p3 }
  0x71   :  { %763 = shalt.err (!%p760_p7)  }
  0x72   :  { %s764_s24 = scalar_lea.vmem %s107_s16, 16  ;;  %p769_p9 = scmp.lt.s32.totalorder %s107_s16, %s1123_s21 }
  0x73   :  { %p765_p8 = scmp.ne.s32.totalorder %s107_s16, %s764_s24  ;;  %p770_p10 = scmp.lt.s32.totalorder %s1153_s15, %s764_s24 }
  0x75   :  { %p771_p11 = por %p770_p10, %p769_p9 }
  0x77   :  { %p772_p12 = pnand %p771_p11, %p765_p8 }
  0x79   :  { %775 = shalt.err (!%p772_p12)  }
  0x7a   :  { %109 = dma.hbm_to_vmem [thread:$0]  %s96_s2, 16, %s107_s16, [#allocation3 + $0x4] }
  0x7b   :  { %s113_s8 = scalar_lea.hbm %s1369_s1, %s572_s29  ;;  %s574_s9 = sshll.u32 %s1199_s0, 4 }
  0x7c   :  { %s776_s10 = scalar_lea.hbm %s113_s8, 16  ;;  %p779_p0 = scmp.lt.s32.totalorder %s113_s8, %s1369_s1 }
  0x7d   :  { %p777_p13 = scmp.ne.s32.totalorder %s113_s8, %s776_s10  ;;  %p780_p1 = scmp.lt.s32.totalorder %s1144_s11, %s776_s10 }
  0x7f   :  { %p781_p2 = por %p780_p1, %p779_p0 }
  0x81   :  { %p782_p3 = pnand %p781_p2, %p777_p13 }
  0x83   :  { %785 = shalt.err (!%p782_p3)  }
  0x84   :  { %s786_s27 = scalar_lea.vmem %s1201_s19, 16  ;;  %p791_p5 = scmp.lt.s32.totalorder %s1201_s19, %s1123_s21 }
  0x85   :  { %p787_p4 = scmp.ne.s32.totalorder %s1201_s19, %s786_s27  ;;  %p792_p6 = scmp.lt.s32.totalorder %s1153_s15, %s786_s27 }
  0x87   :  { %p793_p7 = por %p792_p6, %p791_p5 }
  0x89   :  { %p794_p8 = pnand %p793_p7, %p787_p4 }
  0x8b   :  { %797 = shalt.err (!%p794_p8)  }
  0x8c   :  { %126 = dma.hbm_to_vmem [thread:$0]  %s113_s8, 16, %s1201_s19, [#allocation3 + $0x5] }
  0x8d   :  { %s130_s17 = scalar_lea.hbm %s1369_s1, %s574_s9  ;;  %s576_s18 = sshll.u32 %s1203_s23, 4 }
  0x8e   :  { %s798_s0 = scalar_lea.hbm %s130_s17, 16  ;;  %p801_p10 = scmp.lt.s32.totalorder %s130_s17, %s1369_s1 }
  0x8f   :  { %p799_p9 = scmp.ne.s32.totalorder %s130_s17, %s798_s0  ;;  %p802_p11 = scmp.lt.s32.totalorder %s1144_s11, %s798_s0 }
  0x91   :  { %p803_p12 = por %p802_p11, %p801_p10 }
  0x93   :  { %p804_p13 = pnand %p803_p12, %p799_p9 }
  0x95   :  { %807 = shalt.err (!%p804_p13)  }
  0x96   :  { %s808_s19 = scalar_lea.vmem %s1205_s22, 16  ;;  %p813_p1 = scmp.lt.s32.totalorder %s1205_s22, %s1123_s21 }
  0x97   :  { %p809_p0 = scmp.ne.s32.totalorder %s1205_s22, %s808_s19  ;;  %p814_p2 = scmp.lt.s32.totalorder %s1153_s15, %s808_s19 }
  0x99   :  { %p815_p3 = por %p814_p2, %p813_p1 }
  0x9b   :  { %p816_p4 = pnand %p815_p3, %p809_p0 }
  0x9d   :  { %819 = shalt.err (!%p816_p4)  }
  0x9e   :  { %143 = dma.hbm_to_vmem [thread:$0]  %s130_s17, 16, %s1205_s22, [#allocation3 + $0x6] }
  0x9f   :  { %s147_s26 = scalar_lea.hbm %s1369_s1, %s576_s18  ;;  %s1085_s2 = smov [#allocation2 + $0x7]  }
  0xa0   :  { %s157_s29 = sshll.u32 %s1085_s2, 4  ;;  %s577_s4 = sld [smem:[#allocation5 + $0x8]]  ;;  %s158_s29 = int_to_ptr.vmem [resolvable:$true] %s157_s29 }
  0xa1   :  { %s820_s5 = scalar_lea.hbm %s147_s26, 16  ;;  %p823_p6 = scmp.lt.s32.totalorder %s147_s26, %s1369_s1 }
  0xa2   :  { %p821_p5 = scmp.ne.s32.totalorder %s147_s26, %s820_s5  ;;  %p824_p7 = scmp.lt.s32.totalorder %s1144_s11, %s820_s5 }
  0xa4   :  { %p825_p8 = por %p824_p7, %p823_p6 }
  0xa6   :  { %p826_p9 = pnand %p825_p8, %p821_p5 }
  0xa8   :  { %829 = shalt.err (!%p826_p9)  }
  0xa9   :  { %s830_s28 = scalar_lea.vmem %s158_s29, 16  ;;  %p835_p11 = scmp.lt.s32.totalorder %s158_s29, %s1123_s21 }
  0xaa   :  { %p831_p10 = scmp.ne.s32.totalorder %s158_s29, %s830_s28  ;;  %p836_p12 = scmp.lt.s32.totalorder %s1153_s15, %s830_s28 }
  0xac   :  { %p837_p13 = por %p836_p12, %p835_p11 }
  0xae   :  { %p838_p0 = pnand %p837_p13, %p831_p10 }
  0xb0   :  { %841 = shalt.err (!%p838_p0)  }
  0xb1   :  { %160 = dma.hbm_to_vmem [thread:$0]  %s147_s26, 16, %s158_s29, [#allocation3 + $0x7] }
  0xb2   :  { %s1086_s22 = smov [#allocation2 + $0x8]   ;;  %s579_s8 = sld [smem:[#allocation5 + $0x9]] }
  0xb3   :  { %s174_s7 = sshll.u32 %s1086_s22, 4  ;;  %s1087_s9 = smov [#allocation2 + $0x9]   ;;  %s175_s7 = int_to_ptr.vmem [resolvable:$true] %s174_s7 }
  0xb4   :  { %s191_s10 = sshll.u32 %s1087_s9, 4  ;;  %s1254_s12 = sld [smem:[#allocation5 + $0xa]]  ;;  %s1256_s10 = int_to_ptr.vmem [resolvable:$true] %s191_s10 }
  0xb5   :  { %s578_s13 = sshll.u32 %s577_s4, 4 }
  0xb6   :  { %s164_s16 = scalar_lea.hbm %s1369_s1, %s578_s13 }
  0xb7   :  { %s842_s17 = scalar_lea.hbm %s164_s16, 16  ;;  %p845_p2 = scmp.lt.s32.totalorder %s164_s16, %s1369_s1 }
  0xb8   :  { %p843_p1 = scmp.ne.s32.totalorder %s164_s16, %s842_s17  ;;  %p846_p3 = scmp.lt.s32.totalorder %s1144_s11, %s842_s17 }
  0xba   :  { %p847_p4 = por %p846_p3, %p845_p2 }
  0xbc   :  { %p848_p5 = pnand %p847_p4, %p843_p1 }
  0xbe   :  { %851 = shalt.err (!%p848_p5)  }
  0xbf   :  { %s852_s20 = scalar_lea.vmem %s175_s7, 16  ;;  %p857_p7 = scmp.lt.s32.totalorder %s175_s7, %s1123_s21 }
  0xc0   :  { %p853_p6 = scmp.ne.s32.totalorder %s175_s7, %s852_s20  ;;  %p858_p8 = scmp.lt.s32.totalorder %s1153_s15, %s852_s20 }
  0xc2   :  { %p859_p9 = por %p858_p8, %p857_p7 }
  0xc4   :  { %p860_p10 = pnand %p859_p9, %p853_p6 }
  0xc6   :  { %863 = shalt.err (!%p860_p10)  }
  0xc7   :  { %177 = dma.hbm_to_vmem [thread:$0]  %s164_s16, 16, %s175_s7, [#allocation3 + $0x8] }
  0xc8   :  { %s580_s25 = sshll.u32 %s579_s8, 4  ;;  %s1088_s19 = smov [#allocation2 + $0xa]  }
  0xc9   :  { %s208_s23 = sshll.u32 %s1088_s19, 4  ;;  %s181_s2 = scalar_lea.hbm %s1369_s1, %s580_s25  ;;  %s1270_s23 = int_to_ptr.vmem [resolvable:$true] %s208_s23 }
  0xca   :  { %s864_s29 = scalar_lea.hbm %s181_s2, 16  ;;  %p867_p12 = scmp.lt.s32.totalorder %s181_s2, %s1369_s1 }
  0xcb   :  { %p865_p11 = scmp.ne.s32.totalorder %s181_s2, %s864_s29  ;;  %p868_p13 = scmp.lt.s32.totalorder %s1144_s11, %s864_s29 }
  0xcd   :  { %p869_p0 = por %p868_p13, %p867_p12 }
  0xcf   :  { %p870_p1 = pnand %p869_p0, %p865_p11 }
  0xd1   :  { %873 = shalt.err (!%p870_p1)  }
  0xd2   :  { %s874_s6 = scalar_lea.vmem %s1256_s10, 16  ;;  %p879_p3 = scmp.lt.s32.totalorder %s1256_s10, %s1123_s21 }
  0xd3   :  { %p875_p2 = scmp.ne.s32.totalorder %s1256_s10, %s874_s6  ;;  %p880_p4 = scmp.lt.s32.totalorder %s1153_s15, %s874_s6 }
  0xd5   :  { %p881_p5 = por %p880_p4, %p879_p3 }
  0xd7   :  { %p882_p6 = pnand %p881_p5, %p875_p2 }
  0xd9   :  { %885 = shalt.err (!%p882_p6)  }
  0xda   :  { %194 = dma.hbm_to_vmem [thread:$0]  %s181_s2, 16, %s1256_s10, [#allocation3 + $0x9] }
  0xdb   :  { %s582_s24 = sshll.u32 %s1254_s12, 4  ;;  %s583_s28 = sld [smem:[#allocation5 + $0xb]] }
  0xdc   :  { %s198_s8 = scalar_lea.hbm %s1369_s1, %s582_s24 }
  0xdd   :  { %s886_s9 = scalar_lea.hbm %s198_s8, 16  ;;  %p889_p8 = scmp.lt.s32.totalorder %s198_s8, %s1369_s1 }
  0xde   :  { %p887_p7 = scmp.ne.s32.totalorder %s198_s8, %s886_s9  ;;  %p890_p9 = scmp.lt.s32.totalorder %s1144_s11, %s886_s9 }
  0xe0   :  { %p891_p10 = por %p890_p9, %p889_p8 }
  0xe2   :  { %p892_p11 = pnand %p891_p10, %p887_p7 }
  0xe4   :  { %895 = shalt.err (!%p892_p11)  }
  0xe5   :  { %s896_s10 = scalar_lea.vmem %s1270_s23, 16  ;;  %p901_p13 = scmp.lt.s32.totalorder %s1270_s23, %s1123_s21 }
  0xe6   :  { %p897_p12 = scmp.ne.s32.totalorder %s1270_s23, %s896_s10  ;;  %p902_p0 = scmp.lt.s32.totalorder %s1153_s15, %s896_s10 }
  0xe8   :  { %p903_p1 = por %p902_p0, %p901_p13 }
  0xea   :  { %p904_p2 = pnand %p903_p1, %p897_p12 }
  0xec   :  { %907 = shalt.err (!%p904_p2)  }
  0xed   :  { %211 = dma.hbm_to_vmem [thread:$0]  %s198_s8, 16, %s1270_s23, [#allocation3 + $0xa] }
  0xee   :  { %s1089_s12 = smov [#allocation2 + $0xb]   ;;  %s585_s16 = sld [smem:[#allocation5 + $0xc]] }
  0xef   :  { %s225_s14 = sshll.u32 %s1089_s12, 4  ;;  %s1090_s17 = smov [#allocation2 + $0xc]   ;;  %s226_s14 = int_to_ptr.vmem [resolvable:$true] %s225_s14 }
  0xf0   :  { %s242_s18 = sshll.u32 %s1090_s17, 4  ;;  %s1296_s0 = sld [smem:[#allocation5 + $0xd]]  ;;  %s1298_s18 = int_to_ptr.vmem [resolvable:$true] %s242_s18 }
  0xf1   :  { %s584_s20 = sshll.u32 %s583_s28, 4 }
  0xf2   :  { %s215_s30 = scalar_lea.hbm %s1369_s1, %s584_s20 }
  0xf3   :  { %s908_s26 = scalar_lea.hbm %s215_s30, 16  ;;  %p911_p4 = scmp.lt.s32.totalorder %s215_s30, %s1369_s1 }
  0xf4   :  { %p909_p3 = scmp.ne.s32.totalorder %s215_s30, %s908_s26  ;;  %p912_p5 = scmp.lt.s32.totalorder %s1144_s11, %s908_s26 }
  0xf6   :  { %p913_p6 = por %p912_p5, %p911_p4 }
  0xf8   :  { %p914_p7 = pnand %p913_p6, %p909_p3 }
  0xfa   :  { %917 = shalt.err (!%p914_p7)  }
  0xfb   :  { %s918_s23 = scalar_lea.vmem %s226_s14, 16  ;;  %p923_p9 = scmp.lt.s32.totalorder %s226_s14, %s1123_s21 }
  0xfc   :  { %p919_p8 = scmp.ne.s32.totalorder %s226_s14, %s918_s23  ;;  %p924_p10 = scmp.lt.s32.totalorder %s1153_s15, %s918_s23 }
  0xfe   :  { %p925_p11 = por %p924_p10, %p923_p9 }
 0x100   :  { %p926_p12 = pnand %p925_p11, %p919_p8 }
 0x102   :  { %929 = shalt.err (!%p926_p12)  }
 0x103   :  { %228 = dma.hbm_to_vmem [thread:$0]  %s215_s30, 16, %s226_s14, [#allocation3 + $0xb] }
 0x104   :  { %s586_s4 = sshll.u32 %s585_s16, 4  ;;  %s1091_s5 = smov [#allocation2 + $0xd]  }
 0x105   :  { %s259_s6 = sshll.u32 %s1091_s5, 4  ;;  %s232_s22 = scalar_lea.hbm %s1369_s1, %s586_s4  ;;  %s1312_s6 = int_to_ptr.vmem [resolvable:$true] %s259_s6 }
 0x106   :  { %s930_s7 = scalar_lea.hbm %s232_s22, 16  ;;  %p933_p0 = scmp.lt.s32.totalorder %s232_s22, %s1369_s1 }
 0x107   :  { %p931_p13 = scmp.ne.s32.totalorder %s232_s22, %s930_s7  ;;  %p934_p1 = scmp.lt.s32.totalorder %s1144_s11, %s930_s7 }
 0x109   :  { %p935_p2 = por %p934_p1, %p933_p0 }
 0x10b   :  { %p936_p3 = pnand %p935_p2, %p931_p13 }
 0x10d   :  { %939 = shalt.err (!%p936_p3)  }
 0x10e   :  { %s940_s13 = scalar_lea.vmem %s1298_s18, 16  ;;  %p945_p5 = scmp.lt.s32.totalorder %s1298_s18, %s1123_s21 }
 0x10f   :  { %p941_p4 = scmp.ne.s32.totalorder %s1298_s18, %s940_s13  ;;  %p946_p6 = scmp.lt.s32.totalorder %s1153_s15, %s940_s13 }
 0x111   :  { %p947_p7 = por %p946_p6, %p945_p5 }
 0x113   :  { %p948_p8 = pnand %p947_p7, %p941_p4 }
 0x115   :  { %951 = shalt.err (!%p948_p8)  }
 0x116   :  { %245 = dma.hbm_to_vmem [thread:$0]  %s232_s22, 16, %s1298_s18, [#allocation3 + $0xc] }
 0x117   :  { %s588_s27 = sshll.u32 %s1296_s0, 4  ;;  %s589_s10 = sld [smem:[#allocation5 + $0xe]] }
 0x118   :  { %s249_s16 = scalar_lea.hbm %s1369_s1, %s588_s27 }
 0x119   :  { %s952_s17 = scalar_lea.hbm %s249_s16, 16  ;;  %p955_p10 = scmp.lt.s32.totalorder %s249_s16, %s1369_s1 }
 0x11a   :  { %p953_p9 = scmp.ne.s32.totalorder %s249_s16, %s952_s17  ;;  %p956_p11 = scmp.lt.s32.totalorder %s1144_s11, %s952_s17 }
 0x11c   :  { %p957_p12 = por %p956_p11, %p955_p10 }
 0x11e   :  { %p958_p13 = pnand %p957_p12, %p953_p9 }
 0x120   :  { %961 = shalt.err (!%p958_p13)  }
 0x121   :  { %s962_s18 = scalar_lea.vmem %s1312_s6, 16  ;;  %p967_p1 = scmp.lt.s32.totalorder %s1312_s6, %s1123_s21 }
 0x122   :  { %p963_p0 = scmp.ne.s32.totalorder %s1312_s6, %s962_s18  ;;  %p968_p2 = scmp.lt.s32.totalorder %s1153_s15, %s962_s18 }
 0x124   :  { %p969_p3 = por %p968_p2, %p967_p1 }
 0x126   :  { %p970_p4 = pnand %p969_p3, %p963_p0 }
 0x128   :  { %973 = shalt.err (!%p970_p4)  }
 0x129   :  { %262 = dma.hbm_to_vmem [thread:$0]  %s249_s16, 16, %s1312_s6, [#allocation3 + $0xd] }
 0x12a   :  { %s1092_s0 = smov [#allocation2 + $0xe]   ;;  %s591_s30 = sld [smem:[#allocation5 + $0xf]] }
 0x12b   :  { %s276_s19 = sshll.u32 %s1092_s0, 4  ;;  %s1093_s26 = smov [#allocation2 + $0xf]   ;;  %s277_s19 = int_to_ptr.vmem [resolvable:$true] %s276_s19 }
 0x12c   :  { %s293_s2 = sshll.u32 %s1093_s26, 4  ;;  %s590_s29 = sshll.u32 %s589_s10, 4  ;;  %s1341_s2 = int_to_ptr.vmem [resolvable:$true] %s293_s2 }
 0x12d   :  { %s266_s5 = scalar_lea.hbm %s1369_s1, %s590_s29 }
 0x12e   :  { %s974_s24 = scalar_lea.hbm %s266_s5, 16  ;;  %p977_p6 = scmp.lt.s32.totalorder %s266_s5, %s1369_s1 }
 0x12f   :  { %p975_p5 = scmp.ne.s32.totalorder %s266_s5, %s974_s24  ;;  %p978_p7 = scmp.lt.s32.totalorder %s1144_s11, %s974_s24 }
 0x131   :  { %p979_p8 = por %p978_p7, %p977_p6 }
 0x133   :  { %p980_p9 = pnand %p979_p8, %p975_p5 }
 0x135   :  { %983 = shalt.err (!%p980_p9)  }
 0x136   :  { %s984_s6 = scalar_lea.vmem %s277_s19, 16  ;;  %p989_p11 = scmp.lt.s32.totalorder %s277_s19, %s1123_s21 }
 0x137   :  { %p985_p10 = scmp.ne.s32.totalorder %s277_s19, %s984_s6  ;;  %p990_p12 = scmp.lt.s32.totalorder %s1153_s15, %s984_s6 }
 0x139   :  { %p991_p13 = por %p990_p12, %p989_p11 }
 0x13b   :  { %p992_p0 = pnand %p991_p13, %p985_p10 }
 0x13d   :  { %995 = shalt.err (!%p992_p0)  }
 0x13e   :  { %279 = dma.hbm_to_vmem [thread:$0]  %s266_s5, 16, %s277_s19, [#allocation3 + $0xe] }
 0x13f   :  { %s592_s7 = sshll.u32 %s591_s30, 4 }
 0x140   :  { %s283_s13 = scalar_lea.hbm %s1369_s1, %s592_s7 }
 0x141   :  { %s996_s27 = scalar_lea.hbm %s283_s13, 16  ;;  %p999_p2 = scmp.lt.s32.totalorder %s283_s13, %s1369_s1 }
 0x142   :  { %p997_p1 = scmp.ne.s32.totalorder %s283_s13, %s996_s27  ;;  %p1000_p3 = scmp.lt.s32.totalorder %s1144_s11, %s996_s27 }
 0x144   :  { %p1001_p4 = por %p1000_p3, %p999_p2 }
 0x146   :  { %p1002_p5 = pnand %p1001_p4, %p997_p1 }
 0x148   :  { %1005 = shalt.err (!%p1002_p5)  }
 0x149   :  { %s1006_s14 = scalar_lea.vmem %s1341_s2, 16  ;;  %p1011_p7 = scmp.lt.s32.totalorder %s1341_s2, %s1123_s21 }
 0x14a   :  { %p1007_p6 = scmp.ne.s32.totalorder %s1341_s2, %s1006_s14  ;;  %p1012_p8 = scmp.lt.s32.totalorder %s1153_s15, %s1006_s14 }
 0x14c   :  { %p1013_p9 = por %p1012_p8, %p1011_p7 }
 0x14e   :  { %p1014_p10 = pnand %p1013_p9, %p1007_p6 }
 0x150   :  { %1017 = shalt.err (!%p1014_p10)  }
 0x151   :  { %296 = dma.hbm_to_vmem [thread:$0]  %s283_s13, 16, %s1341_s2, [#allocation3 + $0xf] }
 0x152   :  { %1042 = dma.done.wait [#allocation3], 16 }
 0x153   :  { %1043 = vsyncadd [#allocation3], 4294967280 }
 0x154   :  { %1044 = dma.done.wait [#allocation3 + $0x1], 16 }
 0x155   :  { %1045 = vsyncadd [#allocation3 + $0x1], 4294967280 }
 0x156   :  { %1046 = dma.done.wait [#allocation3 + $0x2], 16 }
 0x157   :  { %1047 = vsyncadd [#allocation3 + $0x2], 4294967280 }
 0x158   :  { %1048 = dma.done.wait [#allocation3 + $0x3], 16 }
 0x159   :  { %1049 = vsyncadd [#allocation3 + $0x3], 4294967280 }
 0x15a   :  { %1050 = dma.done.wait [#allocation3 + $0x4], 16 }
 0x15b   :  { %1051 = vsyncadd [#allocation3 + $0x4], 4294967280 }
 0x15c   :  { %1052 = dma.done.wait [#allocation3 + $0x5], 16 }
 0x15d   :  { %1053 = vsyncadd [#allocation3 + $0x5], 4294967280 }
 0x15e   :  { %1054 = dma.done.wait [#allocation3 + $0x6], 16 }
 0x15f   :  { %1055 = vsyncadd [#allocation3 + $0x6], 4294967280 }
 0x160   :  { %1056 = dma.done.wait [#allocation3 + $0x7], 16 }
 0x161   :  { %1057 = vsyncadd [#allocation3 + $0x7], 4294967280 }
 0x162   :  { %1058 = dma.done.wait [#allocation3 + $0x8], 16 }
 0x163   :  { %1059 = vsyncadd [#allocation3 + $0x8], 4294967280 }
 0x164   :  { %1060 = dma.done.wait [#allocation3 + $0x9], 16 }
 0x165   :  { %1061 = vsyncadd [#allocation3 + $0x9], 4294967280 }
 0x166   :  { %1062 = dma.done.wait [#allocation3 + $0xa], 16 }
 0x167   :  { %1063 = vsyncadd [#allocation3 + $0xa], 4294967280 }
 0x168   :  { %1064 = dma.done.wait [#allocation3 + $0xb], 16 }
 0x169   :  { %1065 = vsyncadd [#allocation3 + $0xb], 4294967280 }
 0x16a   :  { %1066 = dma.done.wait [#allocation3 + $0xc], 16 }
 0x16b   :  { %1067 = vsyncadd [#allocation3 + $0xc], 4294967280 }
 0x16c   :  { %1068 = dma.done.wait [#allocation3 + $0xd], 16 }
 0x16d   :  { %1069 = vsyncadd [#allocation3 + $0xd], 4294967280 }
 0x16e   :  { %1070 = dma.done.wait [#allocation3 + $0xe], 16 }
 0x16f   :  { %1071 = vsyncadd [#allocation3 + $0xe], 4294967280 }
 0x170   :  { %1072 = dma.done.wait [#allocation3 + $0xf], 16 }
 0x171   :  { %1073 = vsyncadd [#allocation3 + $0xf], 4294967280  ;;  %s1094_s1 = smov [#allocation9]   ;;  %v330_v0 = vld [vmem:[#allocation2] sm:$0x3] }
 0x172   :  { %s1362_s21 = sshll.u32 %s1094_s1, 4  ;;  %v593_v1 = vld [vmem:[#allocation6] ss:$0 sm:$0xff]  ;;  %v339_v2 = vld [vmem:[#allocation2 + $0x2] sm:$0x3]  ;;  %s408_s21 = int_to_ptr.vmem [resolvable:$true] %s1362_s21 }
 0x173   :  { %v331_v3 = vmul.f32 11.313708, %v330_v0  ;;  %v340_v4 = vmul.f32 11.313708, %v339_v2  ;;  %v594_v5 = vld [vmem:[#allocation6 + $0x1] ss:$0 sm:$0xff]  ;;  %p1023_p12 = scmp.lt.s32.totalorder %s408_s21, %s408_s21 }
 0x174   :  { %v348_v6 = vld [vmem:[#allocation2 + $0x4] sm:$0x3]  ;;  %v595_v7 = vld [vmem:[#allocation6 + $0x2] ss:$0 sm:$0xff]  ;;  %v357_v8 = vld [vmem:[#allocation2 + $0x6] sm:$0x3] }
 0x175   :  { %v337_v9 = vadd.f32 %v593_v1, %v331_v3  ;;  %v346_v10 = vadd.f32 %v594_v5, %v340_v4  ;;  %v349_v11 = vmul.f32 11.313708, %v348_v6  ;;  %v358_v12 = vmul.f32 11.313708, %v357_v8  ;;  %v596_v13 = vld [vmem:[#allocation6 + $0x3] ss:$0 sm:$0xff] }
 0x176   :  { %v366_v14 = vld [vmem:[#allocation2 + $0x8] sm:$0x3]  ;;  %v597_v15 = vld [vmem:[#allocation6 + $0x4] ss:$0 sm:$0xff]  ;;  %v375_v16 = vld [vmem:[#allocation2 + $0xa] sm:$0x3] }
 0x177   :  { %338 = vst [vmem:[#allocation9] sm:$0x3] %v337_v9  ;;  %347 = vst [vmem:[#allocation9 + $0x2] sm:$0x3] %v346_v10  ;;  %v355_v17 = vadd.f32 %v595_v7, %v349_v11  ;;  %v364_v18 = vadd.f32 %v596_v13, %v358_v12  ;;  %v367_v19 = vmul.f32 11.313708, %v366_v14 }
 0x178   :  { %v376_v20 = vmul.f32 11.313708, %v375_v16  ;;  %v598_v21 = vld [vmem:[#allocation6 + $0x5] ss:$0 sm:$0xff]  ;;  %v384_v22 = vld [vmem:[#allocation2 + $0xc] sm:$0x3] }
 0x179   :  { %v599_v23 = vld [vmem:[#allocation6 + $0x6] ss:$0 sm:$0xff]  ;;  %v393_v24 = vld [vmem:[#allocation2 + $0xe] sm:$0x3]  ;;  %356 = vst [vmem:[#allocation9 + $0x4] sm:$0x3] %v355_v17  ;;  %v373_v25 = vadd.f32 %v597_v15, %v367_v19 }
 0x17a   :  { %365 = vst [vmem:[#allocation9 + $0x6] sm:$0x3] %v364_v18  ;;  %v382_v26 = vadd.f32 %v598_v21, %v376_v20  ;;  %v385_v27 = vmul.f32 11.313708, %v384_v22  ;;  %v394_v28 = vmul.f32 11.313708, %v393_v24 }
 0x17b   :  { %v600_v29 = vld [vmem:[#allocation6 + $0x7] ss:$0 sm:$0xff]  ;;  %374 = vst [vmem:[#allocation9 + $0x8] sm:$0x3] %v373_v25  ;;  %s1018_s11 = scalar_lea.vmem %s408_s21, 256 }
 0x17c   :  { %383 = vst [vmem:[#allocation9 + $0xa] sm:$0x3] %v382_v26  ;;  %v391_v30 = vadd.f32 %v599_v23, %v385_v27  ;;  %v400_v31 = vadd.f32 %v600_v29, %v394_v28  ;;  %p1019_p11 = scmp.ne.s32.totalorder %s408_s21, %s1018_s11  ;;  %p1024_p13 = scmp.lt.s32.totalorder %s1018_s11, %s1018_s11 }
 0x17e   :  { %392 = vst [vmem:[#allocation9 + $0xc] sm:$0x3] %v391_v30  ;;  %401 = vst [vmem:[#allocation9 + $0xe] sm:$0x3] %v400_v31  ;;  %p1025_p0 = por %p1024_p13, %p1023_p12 }
 0x180   :  { %p1026_p1 = pnand %p1025_p0, %p1019_p11 }
 0x182   :  { %1029 = shalt.err (!%p1026_p1)
}
 0x183   :  { %s1095_s15 = smov 128   ;;  %s1096_s16 = smov 8  }
 0x184   :  { %413 = dma.vmem_to_hbm [thread:$0]  %s408_s21, 256, %s1371_s3, [#allocation8], %s1095_s15, %s1095_s15, %s1096_s16  }
 0x185   :  { %1074 = dma.done.wait [#allocation8], 256  }
 0x186   :  { %1075 = vsyncadd [#allocation8], 4294967040 }
 0x187   :  { %417 = vsyncpa [#allocation7], 1 }
 0x188   :  { %418 = vsyncpa [#allocation8], 1 }
 0x189   :  { %419 = vsyncmov [#allocation3] }
 0x18c   :  { %s420_s25 = vpop.sfrf %419 }
 0x18d   :  { %p601_p2 = scmp.ne.s32.totalorder %s420_s25, 0 }
 0x18f   :  { %424 = shalt.err (%p601_p2)  }
 0x190   :  { %426 = vsyncmov [#allocation3 + $0x1] }
 0x193   :  { %s427_s18 = vpop.sfrf %426 }
 0x194   :  { %p602_p3 = scmp.ne.s32.totalorder %s427_s18, 0 }
 0x196   :  { %431 = shalt.err (%p602_p3)  }
 0x197   :  { %433 = vsyncmov [#allocation3 + $0x2] }
 0x19a   :  { %s434_s0 = vpop.sfrf %433 }
 0x19b   :  { %p603_p4 = scmp.ne.s32.totalorder %s434_s0, 0 }
 0x19d   :  { %438 = shalt.err (%p603_p4)  }
 0x19e   :  { %440 = vsyncmov [#allocation3 + $0x3] }
 0x1a1   :  { %s441_s19 = vpop.sfrf %440 }
 0x1a2   :  { %p604_p5 = scmp.ne.s32.totalorder %s441_s19, 0 }
 0x1a4   :  { %445 = shalt.err (%p604_p5)  }
 0x1a5   :  { %447 = vsyncmov [#allocation3 + $0x4] }
 0x1a8   :  { %s448_s3 = vpop.sfrf %447 }
 0x1a9   :  { %p605_p6 = scmp.ne.s32.totalorder %s448_s3, 0 }
 0x1ab   :  { %452 = shalt.err (%p605_p6)  }
 0x1ac   :  { %454 = vsyncmov [#allocation3 + $0x5] }
 0x1af   :  { %s455_s30 = vpop.sfrf %454 }
 0x1b0   :  { %p606_p7 = scmp.ne.s32.totalorder %s455_s30, 0 }
 0x1b2   :  { %459 = shalt.err (%p606_p7)  }
 0x1b3   :  { %461 = vsyncmov [#allocation3 + $0x6] }
 0x1b6   :  { %s462_s26 = vpop.sfrf %461 }
 0x1b7   :  { %p607_p8 = scmp.ne.s32.totalorder %s462_s26, 0 }
 0x1b9   :  { %466 = shalt.err (%p607_p8)  }
 0x1ba   :  { %468 = vsyncmov [#allocation3 + $0x7] }
 0x1bd   :  { %s469_s2 = vpop.sfrf %468 }
 0x1be   :  { %p608_p9 = scmp.ne.s32.totalorder %s469_s2, 0 }
 0x1c0   :  { %473 = shalt.err (%p608_p9)  }
 0x1c1   :  { %475 = vsyncmov [#allocation3 + $0x8] }
 0x1c4   :  { %s476_s29 = vpop.sfrf %475 }
 0x1c5   :  { %p609_p10 = scmp.ne.s32.totalorder %s476_s29, 0 }
 0x1c7   :  { %480 = shalt.err (%p609_p10)  }
 0x1c8   :  { %482 = vsyncmov [#allocation3 + $0x9] }
 0x1cb   :  { %s483_s23 = vpop.sfrf %482 }
 0x1cc   :  { %p610_p11 = scmp.ne.s32.totalorder %s483_s23, 0 }
 0x1ce   :  { %487 = shalt.err (%p610_p11)  }
 0x1cf   :  { %489 = vsyncmov [#allocation3 + $0xa] }
 0x1d2   :  { %s490_s4 = vpop.sfrf %489 }
 0x1d3   :  { %p611_p12 = scmp.ne.s32.totalorder %s490_s4, 0 }
 0x1d5   :  { %494 = shalt.err (%p611_p12)  }
 0x1d6   :  { %496 = vsyncmov [#allocation3 + $0xb] }
 0x1d9   :  { %s497_s5 = vpop.sfrf %496 }
 0x1da   :  { %p612_p13 = scmp.ne.s32.totalorder %s497_s5, 0 }
 0x1dc   :  { %501 = shalt.err (%p612_p13)  }
 0x1dd   :  { %503 = vsyncmov [#allocation3 + $0xc] }
 0x1e0   :  { %s504_s24 = vpop.sfrf %503 }
 0x1e1   :  { %p613_p0 = scmp.ne.s32.totalorder %s504_s24, 0 }
 0x1e3   :  { %508 = shalt.err (%p613_p0)  }
 0x1e4   :  { %510 = vsyncmov [#allocation3 + $0xd] }
 0x1e7   :  { %s511_s28 = vpop.sfrf %510 }
 0x1e8   :  { %p614_p1 = scmp.ne.s32.totalorder %s511_s28, 0 }
 0x1ea   :  { %515 = shalt.err (%p614_p1)  }
 0x1eb   :  { %517 = vsyncmov [#allocation3 + $0xe] }
 0x1ee   :  { %s518_s22 = vpop.sfrf %517 }
 0x1ef   :  { %p615_p2 = scmp.ne.s32.totalorder %s518_s22, 0 }
 0x1f1   :  { %522 = shalt.err (%p615_p2)  }
 0x1f2   :  { %524 = vsyncmov [#allocation3 + $0xf] }
 0x1f5   :  { %s525_s6 = vpop.sfrf %524 }
 0x1f6   :  { %p616_p3 = scmp.ne.s32.totalorder %s525_s6, 0 }
 0x1f8   :  { %529 = shalt.err (%p616_p3)  }

</bundles_post_ra>
